<compile_context>
chip_gen: v5e
topology: v5e:2x2
jax: 0.10.0
libtpu: 0.0.40
codegen_flags: <defaults>
</compile_context>

<pallas_src>
import jax
import jax.numpy as jnp
from jax.experimental import pallas as pl
from jax.experimental.pallas import tpu as pltpu


def _adapter_kernel(clip_ref, vae_ref, wt_ref, b_ref, out_ref):
    # clip_ref : (B, N_clip, E_t)   f32  -- E_t-column slice of clip
    # vae_ref  : (4, B*C, 1280)     bf16 -- axis 0 = the four 2x2 pool window positions
    # wt_ref   : (1280, E_t)        bf16 -- vae2clip weight column tile (pre-transposed)
    # b_ref    : (1, E_t)           f32
    # out_ref  : (B, N_clip+C, E_t)
    n_clip = clip_ref.shape[1]
    bsz = out_ref.shape[0]
    c = out_ref.shape[1] - n_clip

    # MaxPool2d(2) + 'b c h w -> b c (h w)': pure-VPU leading-axis max,
    # hidden under the weight-column DMA.
    pooled = jnp.max(vae_ref[...], axis=0)                     # (B*C, 1280) bf16

    # Native bf16 MXU matmul, f32 accumulation; bias add in f32.
    y = jnp.dot(pooled, wt_ref[...],
                preferred_element_type=jnp.float32)            # (B*C, E_t) f32
    y = y + b_ref[...]

    # Fused torch.cat((clip, vae_proj), dim=1).
    out_ref[:, :n_clip, :] = clip_ref[...].astype(out_ref.dtype)
    # B is tiny & static; per-batch slices keep lowering trivially safe
    # (n_clip=50 is not sublane-aligned, so these are masked stores either way).
    for b in range(bsz):
        out_ref[b, n_clip:n_clip + c, :] = (
            y[b * c:(b + 1) * c, :].astype(out_ref.dtype))


def _window_major(vae):
    """(B, C, H, W) -> (4, B*C, (H//2)*(W//2)); pool-window position on axis 0."""
    B, C, H, W = vae.shape
    v = vae.reshape(B, C, H // 2, 2, W // 2, 2)
    v = v.transpose(3, 5, 0, 1, 2, 4)                          # (2, 2, B, C, H//2, W//2)
    return v.reshape(4, B * C, (H // 2) * (W // 2))


def embedding_adapter(clip, vae, vae2clip_wt, vae2clip_b):
    """Pallas port of Embedding_Adapter.forward.

    clip        : (B, N_clip, 768) f32
    vae         : (B, C, H, W)     f32 NCHW; (H//2)*(W//2) must equal 1280
    vae2clip_wt : (1280, 768)      bf16, nn.Linear weight PRE-TRANSPOSED and
                                   pre-cast ONCE at parameter-load time
    vae2clip_b  : (768,)           f32
    returns     : (B, N_clip + C, 768) == cat((clip, Linear(pool(vae))), dim=1)
    """
    B, C, H, W = vae.shape
    hw = (H // 2) * (W // 2)
    K, E = vae2clip_wt.shape
    assert hw == K == 1280, "MaxPool2d(2) output must flatten to 1280 features"
    n_clip = clip.shape[1]
    n_out = n_clip + C
    # B*C == 8 keeps the matmul M dim a full sublane group; other values still
    # compile (full-dim block) but pad the M layout.

    # Two E-column tiles (384 = 3*128 each): "parallel" lets v7x's two cores
    # stream disjoint weight halves; single-TC parts pipeline the 2 steps.
    grid_e = 2 if (E % 256 == 0) else 1
    e_t = E // grid_e

    # Window-major relayout + bf16 cast (max commutes with monotone rounding,
    # so this equals pooling in f32 and then casting the activations to bf16).
    vae_wm = _window_major(vae).astype(jnp.bfloat16)           # (4, B*C, 1280)
    bias2d = vae2clip_b.reshape(1, E).astype(jnp.float32)

    cost = pl.CostEstimate(
        flops=2 * B * C * K * E,
        transcendentals=0,
        bytes_accessed=(clip.size * 4 + vae_wm.size * 2 + vae2clip_wt.size * 2
                        + bias2d.size * 4 + B * n_out * E * 4),
    )

    return pl.pallas_call(
        _adapter_kernel,
        out_shape=jax.ShapeDtypeStruct((B, n_out, E), clip.dtype),
        grid_spec=pltpu.PrefetchScalarGridSpec(
            num_scalar_prefetch=0,
            grid=(grid_e,),
            in_specs=[
                pl.BlockSpec((B, n_clip, e_t), lambda j: (0, 0, j)),
                pl.BlockSpec((4, B * C, K), lambda j: (0, 0, 0)),
                pl.BlockSpec((K, e_t), lambda j: (0, j)),
                pl.BlockSpec((1, e_t), lambda j: (0, j)),
            ],
            out_specs=pl.BlockSpec((B, n_out, e_t), lambda j: (0, 0, j)),
        ),
        compiler_params=pltpu.CompilerParams(
            dimension_semantics=("parallel",)),
        cost_estimate=cost,
    )(clip, vae_wm, vae2clip_wt, bias2d)


if __name__ == "__main__":
    key = jax.random.PRNGKey(0)
    k_clip, k_vae, k_w, k_b = jax.random.split(key, 4)

    # Smallest shapes consistent with the module: Linear(1280, 768) forces
    # (H//2)*(W//2) == 1280 -> H=80, W=64; clip carries 50 tokens of dim 768.
    B, C, H, W = 2, 4, 80, 64
    N_CLIP, E = 50, 768

    clip = jax.random.normal(k_clip, (B, N_CLIP, E), dtype=jnp.float32)
    vae = jax.random.normal(k_vae, (B, C, H, W), dtype=jnp.float32)
    vae2clip_w = 0.02 * jax.random.normal(k_w, (E, 1280), dtype=jnp.float32)   # torch layout
    vae2clip_b = 0.02 * jax.random.normal(k_b, (E,), dtype=jnp.float32)

    # One-time parameter preprocessing (checkpoint-load time, NOT per forward):
    # transpose to (K, E) and cast to bf16 — halves the dominant HBM read.
    # Accuracy impact is ~1e-2 rel on the vae rows only (flagged to caller).
    vae2clip_wt = jax.block_until_ready(
        jnp.asarray(vae2clip_w.T, dtype=jnp.bfloat16))                         # (1280, 768)

    out = jax.block_until_ready(
        embedding_adapter(clip, vae, vae2clip_wt, vae2clip_b))
    assert out.shape == (B, N_CLIP + C, E), out.shape

    # Pure-JAX reference using the same bf16 weight/activation rounding and
    # f32 accumulation, so this tightly checks pooling / matmul / concat logic.
    pooled = jax.lax.reduce_window(vae, -jnp.inf, jax.lax.max,
                                   (1, 1, 2, 2), (1, 1, 2, 2), "VALID")
    pooled = pooled.reshape(B * C, -1).astype(jnp.bfloat16)     # 'b c h w -> (b c) (h w)'
    ref_vae = jnp.dot(pooled, vae2clip_wt,
                      preferred_element_type=jnp.float32).reshape(B, C, E) + vae2clip_b
    ref = jnp.concatenate((clip, ref_vae), axis=1)
    err = float(jnp.max(jnp.abs(out - ref)))
    assert jnp.allclose(out, ref, atol=1e-2, rtol=1e-2), err

    print("KERNEL_OK")
</pallas_src>

<mosaic_0001>
module attributes {stable_mosaic.version = 11 : i64} {
  func.func @_adapter_kernel(%arg0: i32, %arg1: memref<2x50x384xf32, #tpu.memory_space<vmem>>, %arg2: memref<4x8x1280xbf16, #tpu.memory_space<vmem>>, %arg3: memref<1280x384xbf16, #tpu.memory_space<vmem>>, %arg4: memref<1x384xf32, #tpu.memory_space<vmem>>, %arg5: memref<2x54x384xf32, #tpu.memory_space<vmem>>) attributes {dimension_semantics = [#tpu.dimension_semantics<parallel>], iteration_bounds = array<i64: 2>, scalar_prefetch = 0 : i64, scratch_operands = 0 : i64, tpu.core_type = #tpu.core_type<tc>, window_params = [{transform_indices = @transform_0, window_bounds = array<i64: 2, 50, 384>}, {pipeline_mode = #tpu.pipeline_mode<synchronous>, transform_indices = @transform_1, window_bounds = array<i64: 4, 8, 1280>}, {transform_indices = @transform_2, window_bounds = array<i64: 1280, 384>}, {transform_indices = @transform_3, window_bounds = array<i64: 1, 384>}, {transform_indices = @transform_4, window_bounds = array<i64: 2, 54, 384>}]} {
    %c0 = arith.constant 0 : index
    %c0_0 = arith.constant 0 : index
    %c0_1 = arith.constant 0 : index
    %0 = vector.load %arg2[%c0, %c0_0, %c0_1] : memref<4x8x1280xbf16, #tpu.memory_space<vmem>>, vector<4x8x1280xbf16>
    %cst = arith.constant dense<0xFF80> : vector<8x1280xbf16>
    %1 = vector.multi_reduction <maximumf>, %0, %cst [0] : vector<4x8x1280xbf16> to vector<8x1280xbf16>
    %c0_2 = arith.constant 0 : index
    %c0_3 = arith.constant 0 : index
    %2 = vector.load %arg3[%c0_2, %c0_3] : memref<1280x384xbf16, #tpu.memory_space<vmem>>, vector<1280x384xbf16>
    %cst_4 = arith.constant dense<0.000000e+00> : vector<8x384xf32>
    %3 = tpu.matmul %1, %2, %cst_4 {dimension_numbers = #tpu.dot_dimension_numbers<[1], [0], [0], [1], [0, 0, 1, 1], [], []>} : vector<8x1280xbf16>, vector<1280x384xbf16>, vector<8x384xf32> -> vector<8x384xf32>
    %c0_5 = arith.constant 0 : index
    %c0_6 = arith.constant 0 : index
    %4 = vector.load %arg4[%c0_5, %c0_6] : memref<1x384xf32, #tpu.memory_space<vmem>>, vector<1x384xf32>
    %5 = vector.broadcast %4 : vector<1x384xf32> to vector<8x384xf32>
    %6 = arith.addf %3, %5 : vector<8x384xf32>
    %c0_7 = arith.constant 0 : index
    %c0_8 = arith.constant 0 : index
    %c0_9 = arith.constant 0 : index
    %7 = vector.load %arg1[%c0_7, %c0_8, %c0_9] : memref<2x50x384xf32, #tpu.memory_space<vmem>>, vector<2x50x384xf32>
    %c0_10 = arith.constant 0 : index
    %c0_11 = arith.constant 0 : index
    %c0_12 = arith.constant 0 : index
    %8 = vector.load %arg5[%c0_10, %c0_11, %c0_12] : memref<2x54x384xf32, #tpu.memory_space<vmem>>, vector<2x50x384xf32>
    tpu.vector_store %arg5[%c0_10, %c0_11, %c0_12], %7 {strides = array<i32>} : memref<2x54x384xf32, #tpu.memory_space<vmem>>, vector<2x50x384xf32>,
    %9 = vector.extract_strided_slice %6 {offsets = [0, 0], sizes = [4, 384], strides = [1, 1]} : vector<8x384xf32> to vector<4x384xf32>
    %c0_13 = arith.constant 0 : index
    %c50 = arith.constant 50 : index
    %c0_14 = arith.constant 0 : index
    %10 = vector.load %arg5[%c0_13, %c50, %c0_14] : memref<2x54x384xf32, #tpu.memory_space<vmem>>, vector<1x4x384xf32>
    %11 = vector.shape_cast %10 : vector<1x4x384xf32> to vector<4x384xf32>
    %12 = vector.shape_cast %9 : vector<4x384xf32> to vector<1x4x384xf32>
    tpu.vector_store %arg5[%c0_13, %c50, %c0_14], %12 {strides = array<i32>} : memref<2x54x384xf32, #tpu.memory_space<vmem>>, vector<1x4x384xf32>,
    %13 = vector.extract_strided_slice %6 {offsets = [4, 0], sizes = [4, 384], strides = [1, 1]} : vector<8x384xf32> to vector<4x384xf32>
    %c1 = arith.constant 1 : index
    %c50_15 = arith.constant 50 : index
    %c0_16 = arith.constant 0 : index
    %14 = vector.load %arg5[%c1, %c50_15, %c0_16] : memref<2x54x384xf32, #tpu.memory_space<vmem>>, vector<1x4x384xf32>
    %15 = vector.shape_cast %14 : vector<1x4x384xf32> to vector<4x384xf32>
    %16 = vector.shape_cast %13 : vector<4x384xf32> to vector<1x4x384xf32>
    tpu.vector_store %arg5[%c1, %c50_15, %c0_16], %16 {strides = array<i32>} : memref<2x54x384xf32, #tpu.memory_space<vmem>>, vector<1x4x384xf32>,
    return
  }
  func.func @transform_0(%arg0: i32) -> (i32, i32, i32) {
    %c0_i32 = arith.constant 0 : i32
    %c0_i32_0 = arith.constant 0 : i32
    %c0_i32_1 = arith.constant 0 : i32
    return %c0_i32, %c0_i32_0, %arg0 : i32, i32, i32
  }
  func.func @transform_1(%arg0: i32) -> (i32, i32, i32) {
    %c0_i32 = arith.constant 0 : i32
    %c0_i32_0 = arith.constant 0 : i32
    %c0_i32_1 = arith.constant 0 : i32
    %c0_i32_2 = arith.constant 0 : i32
    return %c0_i32, %c0_i32_0, %c0_i32_1 : i32, i32, i32
  }
  func.func @transform_2(%arg0: i32) -> (i32, i32) {
    %c0_i32 = arith.constant 0 : i32
    %c0_i32_0 = arith.constant 0 : i32
    return %c0_i32, %arg0 : i32, i32
  }
  func.func @transform_3(%arg0: i32) -> (i32, i32) {
    %c0_i32 = arith.constant 0 : i32
    %c0_i32_0 = arith.constant 0 : i32
    return %c0_i32, %arg0 : i32, i32
  }
  func.func @transform_4(%arg0: i32) -> (i32, i32, i32) {
    %c0_i32 = arith.constant 0 : i32
    %c0_i32_0 = arith.constant 0 : i32
    %c0_i32_1 = arith.constant 0 : i32
    return %c0_i32, %c0_i32_0, %arg0 : i32, i32, i32
  }
}

</mosaic_0001>

<bundles_post_ra>
// kernel: tpu_custom_call.1
= control target key start
LH: loop header
LB: loop body
LE: loop exit
PB: predicated region body
PF: predicated region fallthrough
CT: control target
= control target key end

     0   :  { %s5266_s0 = inlined_call_operand.vmem [shape: f32[2,50,768], index: 0, kind: input, shape index: {}]   ;;  %s5267_s1 = inlined_call_operand.hbm [shape: bf16[4,8,1280], index: 1, kind: input, shape index: {}]   ;;  %s5268_s2 = inlined_call_operand.hbm [shape: bf16[1280,768], index: 2, kind: input, shape index: {}]   ;;  %s5269_s3 = inlined_call_operand.hbm [shape: f32[1,768], index: 3, kind: input, shape index: {}]   ;;  %s5270_s4 = inlined_call_operand.vmem [shape: f32[2,54,768], index: 4, kind: output, shape index: {}]  }
   0x1   :  { %5271 = sst [smem:[#allocation11_spill]] %s5266_s0 }
   0x2   :  { %9 = vsyncpa [#allocation4], 0 }
   0x3   :  { %10 = vsyncpa [#allocation6], 0 }
   0x4   :  { %12 = vsyncpa [#allocation6 + $0x1], 0  ;;  %s4250_s15 = smov 0   ;;  %s4252_s16 = smov 0  }
   0x5   :  { %s4254_s17 = smov 0   ;;  %s4256_s18 = smov 0  }
   0x6 LB: > { %s4269_s19 = sadd.s32 4294967295, %s4217_s18   ;;  %s4272_s20 = sadd.s32 1, %s4217_s18   ;;  %s4217_s18 = sphi %s4256_s18, %s5280_s18   ;;  %s4213_s17 = sphi %s4254_s17, %s5279_s17   ;;  %s4209_s16 = sphi %s4252_s16, %s5278_s16   ;;  %s4205_s15 = sphi %s4250_s15, %s5277_s15  }
   0x7   : > { %s22_s21 = ssub.s32 %s4217_s18, %s4272_s20  ;;  %s25_s22 = sadd.s32 1, %s4213_s17 }
   0x8   : > { %p23_p0 = scmp.eq.s32.totalorder %s22_s21, 0  ;;  %p32_p1 = scmp.ne.s32.totalorder %s4213_s17, %s4209_s16 }
   0x9   : > { %p33_p2 = scmp.eq.s32.totalorder %s4217_s18, 0  ;;  %p85_p3 = scmp.ne.s32.totalorder %s4209_s16, %s4205_s15 }
   0xa   : > { %s4282_s23 = scalar_select %p23_p0, %s4213_s17, %s25_s22  }
   0xb   : > { %p4284_p4 = por %p33_p2, %p32_p1  ;;  %p86_p5 = scmp.eq.s32.totalorder %s4269_s19, 0 }
   0xc   : > { %p135_p6 = scmp.eq.s32.totalorder %s4269_s19, 1  ;;  %p2819_p7 = scmp.ge.s32.totalorder %s4217_s18, 1 }
   0xd   : > { %p4293_p8 = por %p86_p5, %p85_p3  ;;  %p148_p9 = scmp.lt.s32.totalorder %s4217_s18, 3 }
   0xe   : > { %p4298_p10 = por %p135_p6, %p32_p1  ;;  %s159_s30 = sshll.u32 %s5267_s1, 4  ;;  %s160_s30 = int_to_ptr.hbm [resolvable:$true] %s159_s30 }
   0xf   : > { %p4302_p11 = pnand %p2819_p7, %p148_p9  ;;  %s4219_s5 = smov [#allocation3]  }
  0x10   : > { %s161_s6 = sshll.u32 %s4219_s5, 4  ;;  %s4220_s7 = smov 640   ;;  %s162_s6 = int_to_ptr.vmem [resolvable:$true] %s161_s6 }
  0x11   : > { %p4049_p12 = pneg %p4302_p11  ;;  %s4221_s8 = smov 40  }
  0x12   : > { %p2821_p0 = scmp.ge.s32.totalorder %s4217_s18, 2 }
  0x13   : > { %p4050_p13 = pnand %p4049_p12, %p86_p5 }
  0x14   : > { %171 = sbr.rel (%p2821_p0) target bundleno = 112 (0x70), region = 20 }
  0x15   : > { %4052 = dma.hbm_to_vmem [thread:$0]  (!%p4050_p13), %s160_s30, 2560, %s162_s6, [#allocation4], %s4220_s7, %s4220_s7, %s4221_s8  }
  0x19   : > { %174 = sbr.rel (!%p4284_p4) target bundleno = 76 (0x4c), region = 24  ;;  %s176_s9 = sand.u32 (%p4284_p4), 1, %s4213_s17  }
  0x1a   : > { %s3792_s10 = smul.u32 (%p4284_p4), 24, %s4217_s18  ;;  %s5276_s0 = sld [smem:[#allocation11_spill]] (%p4284_p4) }
  0x1b   : > { %s4035_s11 = smul.u32 (%p4284_p4), 336, %s176_s9 }
  0x1d   : > { %s4326_s15 = scalar_lea.vmem (%p4284_p4), [#allocation2], %s4035_s11 }
  0x20   : > { %s4321_s14 = scalar_lea.vmem %s5276_s0, %s3792_s10 }
  0x21   : > { %v194_v0 = vld [vmem:[%s4321_s14] sm:$0xff]  ;;  %v196_v1 = vld [vmem:[%s4321_s14 + $0x8] sm:$0xff]  ;;  %v198_v2 = vld [vmem:[%s4321_s14 + $0x10] sm:$0xff] }
  0x22   : > { %195 = vst [vmem:[%s4326_s15] sm:$0xff] %v194_v0  ;;  %v200_v3 = vld [vmem:[%s4321_s14 + $0x30] sm:$0xff]  ;;  %v202_v4 = vld [vmem:[%s4321_s14 + $0x38] sm:$0xff]  ;;  %v204_v5 = vld [vmem:[%s4321_s14 + $0x40] sm:$0xff] }
  0x23   : > { %197 = vst [vmem:[%s4326_s15 + $0x8] sm:$0xff] %v196_v1  ;;  %v206_v6 = vld [vmem:[%s4321_s14 + $0x60] sm:$0xff]  ;;  %v208_v7 = vld [vmem:[%s4321_s14 + $0x68] sm:$0xff]  ;;  %v210_v8 = vld [vmem:[%s4321_s14 + $0x70] sm:$0xff] }
  0x24   : > { %199 = vst [vmem:[%s4326_s15 + $0x10] sm:$0xff] %v198_v2  ;;  %v212_v9 = vld [vmem:[%s4321_s14 + $0x90] sm:$0xff]  ;;  %v214_v10 = vld [vmem:[%s4321_s14 + $0x98] sm:$0xff]  ;;  %v216_v11 = vld [vmem:[%s4321_s14 + $0xa0] sm:$0xff] }
  0x25   : > { %201 = vst [vmem:[%s4326_s15 + $0x18] sm:$0xff] %v200_v3  ;;  %v218_v12 = vld [vmem:[%s4321_s14 + $0xc0] sm:$0xff]  ;;  %v220_v13 = vld [vmem:[%s4321_s14 + $0xc8] sm:$0xff]  ;;  %v222_v14 = vld [vmem:[%s4321_s14 + $0xd0] sm:$0xff] }
  0x26   : > { %203 = vst [vmem:[%s4326_s15 + $0x20] sm:$0xff] %v202_v4  ;;  %v224_v15 = vld [vmem:[%s4321_s14 + $0xf0] sm:$0xff]  ;;  %v226_v16 = vld [vmem:[%s4321_s14 + $0xf8] sm:$0xff]  ;;  %v228_v17 = vld [vmem:[%s4321_s14 + $0x100] sm:$0xff] }
  0x27   : > { %205 = vst [vmem:[%s4326_s15 + $0x28] sm:$0xff] %v204_v5  ;;  %v230_v18 = vld [vmem:[%s4321_s14 + $0x120] sm:$0xff]  ;;  %v232_v19 = vld [vmem:[%s4321_s14 + $0x128] sm:$0xff]  ;;  %v234_v20 = vld [vmem:[%s4321_s14 + $0x130] sm:$0xff] }
  0x28   : > { %207 = vst [vmem:[%s4326_s15 + $0x30] sm:$0xff] %v206_v6  ;;  %v236_v21 = vld [vmem:[%s4321_s14 + $0x150] sm:$0xff]  ;;  %v238_v22 = vld [vmem:[%s4321_s14 + $0x158] sm:$0xff]  ;;  %v240_v23 = vld [vmem:[%s4321_s14 + $0x160] sm:$0xff] }
  0x29   : > { %209 = vst [vmem:[%s4326_s15 + $0x38] sm:$0xff] %v208_v7  ;;  %v242_v24 = vld [vmem:[%s4321_s14 + $0x180] sm:$0xff]  ;;  %v244_v25 = vld [vmem:[%s4321_s14 + $0x188] sm:$0xff]  ;;  %v246_v26 = vld [vmem:[%s4321_s14 + $0x190] sm:$0xff] }
  0x2a   : > { %211 = vst [vmem:[%s4326_s15 + $0x40] sm:$0xff] %v210_v8  ;;  %v248_v27 = vld [vmem:[%s4321_s14 + $0x1b0] sm:$0xff]  ;;  %v250_v28 = vld [vmem:[%s4321_s14 + $0x1b8] sm:$0xff]  ;;  %v252_v29 = vld [vmem:[%s4321_s14 + $0x1c0] sm:$0xff] }
  0x2b   : > { %213 = vst [vmem:[%s4326_s15 + $0x48] sm:$0xff] %v212_v9  ;;  %v254_v30 = vld [vmem:[%s4321_s14 + $0x1e0] sm:$0xff]  ;;  %v256_v31 = vld [vmem:[%s4321_s14 + $0x1e8] sm:$0xff]  ;;  %v258_v32 = vld [vmem:[%s4321_s14 + $0x1f0] sm:$0xff] }
  0x2c   : > { %215 = vst [vmem:[%s4326_s15 + $0x50] sm:$0xff] %v214_v10  ;;  %v260_v33 = vld [vmem:[%s4321_s14 + $0x210] sm:$0xff]  ;;  %v262_v34 = vld [vmem:[%s4321_s14 + $0x218] sm:$0xff]  ;;  %v264_v35 = vld [vmem:[%s4321_s14 + $0x220] sm:$0xff] }
  0x2d   : > { %217 = vst [vmem:[%s4326_s15 + $0x58] sm:$0xff] %v216_v11  ;;  %v266_v36 = vld [vmem:[%s4321_s14 + $0x240] sm:$0xff]  ;;  %v268_v37 = vld [vmem:[%s4321_s14 + $0x248] sm:$0xff]  ;;  %v270_v38 = vld [vmem:[%s4321_s14 + $0x250] sm:$0xff] }
  0x2e   : > { %219 = vst [vmem:[%s4326_s15 + $0x60] sm:$0xff] %v218_v12  ;;  %v272_v39 = vld [vmem:[%s4321_s14 + $0x270] sm:$0xff]  ;;  %v274_v40 = vld [vmem:[%s4321_s14 + $0x278] sm:$0xff]  ;;  %v276_v41 = vld [vmem:[%s4321_s14 + $0x280] sm:$0xff] }
  0x2f   : > { %221 = vst [vmem:[%s4326_s15 + $0x68] sm:$0xff] %v220_v13 }
  0x30   : > { %223 = vst [vmem:[%s4326_s15 + $0x70] sm:$0xff] %v222_v14 }
  0x31   : > { %225 = vst [vmem:[%s4326_s15 + $0x78] sm:$0xff] %v224_v15 }
  0x32   : > { %227 = vst [vmem:[%s4326_s15 + $0x80] sm:$0xff] %v226_v16 }
  0x33   : > { %229 = vst [vmem:[%s4326_s15 + $0x88] sm:$0xff] %v228_v17 }
  0x34   : > { %231 = vst [vmem:[%s4326_s15 + $0x90] sm:$0xff] %v230_v18 }
  0x35   : > { %233 = vst [vmem:[%s4326_s15 + $0x98] sm:$0xff] %v232_v19 }
  0x36   : > { %235 = vst [vmem:[%s4326_s15 + $0xa0] sm:$0xff] %v234_v20 }
  0x37   : > { %237 = vst [vmem:[%s4326_s15 + $0xa8] sm:$0xff] %v236_v21 }
  0x38   : > { %239 = vst [vmem:[%s4326_s15 + $0xb0] sm:$0xff] %v238_v22 }
  0x39   : > { %241 = vst [vmem:[%s4326_s15 + $0xb8] sm:$0xff] %v240_v23 }
  0x3a   : > { %243 = vst [vmem:[%s4326_s15 + $0xc0] sm:$0xff] %v242_v24 }
  0x3b   : > { %245 = vst [vmem:[%s4326_s15 + $0xc8] sm:$0xff] %v244_v25 }
  0x3c   : > { %247 = vst [vmem:[%s4326_s15 + $0xd0] sm:$0xff] %v246_v26 }
  0x3d   : > { %249 = vst [vmem:[%s4326_s15 + $0xd8] sm:$0xff] %v248_v27 }
  0x3e   : > { %251 = vst [vmem:[%s4326_s15 + $0xe0] sm:$0xff] %v250_v28 }
  0x3f   : > { %253 = vst [vmem:[%s4326_s15 + $0xe8] sm:$0xff] %v252_v29 }
  0x40   : > { %255 = vst [vmem:[%s4326_s15 + $0xf0] sm:$0xff] %v254_v30 }
  0x41   : > { %257 = vst [vmem:[%s4326_s15 + $0xf8] sm:$0xff] %v256_v31 }
  0x42   : > { %259 = vst [vmem:[%s4326_s15 + $0x100] sm:$0xff] %v258_v32 }
  0x43   : > { %261 = vst [vmem:[%s4326_s15 + $0x108] sm:$0xff] %v260_v33 }
  0x44   : > { %263 = vst [vmem:[%s4326_s15 + $0x110] sm:$0xff] %v262_v34 }
  0x45   : > { %265 = vst [vmem:[%s4326_s15 + $0x118] sm:$0xff] %v264_v35 }
  0x46   : > { %267 = vst [vmem:[%s4326_s15 + $0x120] sm:$0xff] %v266_v36 }
  0x47   : > { %269 = vst [vmem:[%s4326_s15 + $0x128] sm:$0xff] %v268_v37 }
  0x48   : > { %271 = vst [vmem:[%s4326_s15 + $0x130] sm:$0xff] %v270_v38 }
  0x49   : > { %273 = vst [vmem:[%s4326_s15 + $0x138] sm:$0xff] %v272_v39 }
  0x4a   : > { %275 = vst [vmem:[%s4326_s15 + $0x140] sm:$0xff] %v274_v40 }
  0x4b   : > { %277 = vst [vmem:[%s4326_s15 + $0x148] sm:$0xff] %v276_v41 }
  0x4c PF: > { %s284_s21 = sand.u32 1, %s4217_s18   ;;  %s286_s22 = sand.u32 1, %s4213_s17  }
  0x4d   : > { %s4036_s28 = smul.u32 1920, %s286_s22  ;;  %s4417_s10 = scalar_lea.sflag [#allocation6], %s284_s21 }
  0x4e   : > { %s3793_s29 = smul.u32 12, %s4217_s18  ;;  %s4129_s15 = scalar_lea.hbm %s5268_s2, 3840 }
  0x4f   : > { %s288_s7 = scalar_lea.vmem [#allocation5], %s4036_s28 }
  0x50   : > { %s293_s6 = scalar_lea.hbm %s5268_s2, %s3793_s29  ;;  %s296_s8 = sshll.u32 %s288_s7, 4  ;;  %s297_s8 = int_to_ptr.vmem [resolvable:$true] %s296_s8 }
  0x51   : > { %s294_s9 = sshll.u32 %s293_s6, 4  ;;  %s295_s9 = int_to_ptr.hbm [resolvable:$true] %s294_s9 }
  0x52   : > { %s4123_s11 = sshra.s32 %s295_s9, 4  ;;  %s4124_s11 = int_to_ptr.hbm [resolvable:$true] %s4123_s11 }
  0x53   : > { %s4125_s12 = scalar_lea.hbm %s4124_s11, 1920  ;;  %p4130_p6 = scmp.lt.s32.totalorder %s4124_s11, %s5268_s2 }
  0x54   : > { %p4126_p1 = scmp.ne.s32.totalorder %s4124_s11, %s4125_s12  ;;  %p4131_p7 = scmp.lt.s32.totalorder %s4129_s15, %s4125_s12 }
  0x56   : > { %p4127_p2 = pnand %p4126_p1, %p4284_p4  ;;  %p4132_p9 = por %p4131_p7, %p4130_p6 }
  0x58   : > { %p4128_p3 = pneg %p4127_p2 }
  0x5a   : > { %p4133_p12 = pnand %p4132_p9, %p4128_p3 }
  0x5c   : > { %4136 = shalt.err (!%p4133_p12)
}
  0x5d   : > { %s4222_s21 = smov 384   ;;  %s4223_s28 = smov 192  }
  0x5e   : > { %s4224_s5 = smov 12   ;;  %s4037_s6 = smul.u32 3, %s286_s22 }
  0x5f   : > { %4043 = dma.hbm_to_vmem [thread:$0]  (%p4284_p4), %s295_s9, 30720, %s297_s8, %s4417_s10, %s4222_s21, %s4223_s28, %s4224_s5  }
  0x60   : > { %s311_s7 = smul.u32 3, %s4217_s18  ;;  %s310_s12 = scalar_lea.vmem [#allocation7], %s4037_s6 }
  0x61   : > { %s318_s15 = sshll.u32 %s310_s12, 4  ;;  %s4157_s18 = scalar_lea.hbm %s5269_s3, 6  ;;  %s319_s15 = int_to_ptr.vmem [resolvable:$true] %s318_s15 }
  0x62   : > { %s314_s11 = scalar_lea.hbm %s5269_s3, %s311_s7 }
  0x63   : > { %s316_s30 = sshll.u32 %s314_s11, 4  ;;  %s317_s30 = int_to_ptr.hbm [resolvable:$true] %s316_s30 }
  0x64   : > { %s4151_s29 = sshra.s32 %s317_s30, 4  ;;  %s4152_s29 = int_to_ptr.hbm [resolvable:$true] %s4151_s29 }
  0x65   : > { %s4153_s0 = scalar_lea.hbm %s4152_s29, 3  ;;  %p4158_p2 = scmp.lt.s32.totalorder %s4152_s29, %s5269_s3 }
  0x66   : > { %p4154_p13 = scmp.ne.s32.totalorder %s4152_s29, %s4153_s0  ;;  %p4159_p3 = scmp.lt.s32.totalorder %s4157_s18, %s4153_s0 }
  0x68   : > { %p4155_p0 = pnand %p4154_p13, %p4284_p4  ;;  %p4160_p6 = por %p4159_p3, %p4158_p2 }
  0x6a   : > { %p4156_p1 = pneg %p4155_p0 }
  0x6c   : > { %p4161_p7 = pnand %p4160_p6, %p4156_p1 }
  0x6e   : > { %4164 = shalt.err (!%p4161_p7)
}
  0x6f   : > { %4044 = dma.hbm_to_vmem [thread:$0]  (%p4284_p4), %s317_s30, 48, %s319_s15, %s4417_s10  }
  0x70 PF: > { %327 = sbr.rel (%p4302_p11) target bundleno = 522 (0x20a), region = 55  ;;  %s4450_s28 = sand.u32 (!%p4302_p11), 1, %s4209_s16  }
  0x71   : > { %s4038_s5 = smul.u32 (!%p4302_p11), 336, %s4450_s28 }
  0x73   : > { %s4455_s0 = scalar_lea.vmem (!%p4302_p11), [#allocation2], %s4038_s5 }
  0x75   : > { %4196 = dma.done.wait (%p86_p5), [#allocation4], 2560  }
  0x76   : > { %4198 = vsyncadd (%p86_p5), [#allocation4], 4294964736  ;;  %s341_s24 = sand.u32 1, %s4269_s19   ;;  %s4039_s27 = smul.u32 1920, %s4450_s28 }
  0x77   : > { %s342_s10 = scalar_lea.sflag [#allocation6], %s341_s24 }
  0x78   : > { %s4463_s6 = scalar_lea.vmem [#allocation5], %s4039_s27 }
  0x79   : > { %4200 = dma.done.wait (%p4293_p8), %s342_s10, 30768  }
  0x7a   : > { %4202 = vsyncadd (%p4293_p8), %s342_s10, 4294936528  ;;  %v2912_v42 = vld [vmem:[%s4463_s6 + $0xa8] sm:$0xf]  ;;  %v3816_v43 = vld [vmem:[%s4463_s6 + $0xb0] sm:$0xf0]  ;;  %s4040_s25 = smul.u32 3, %s4450_s28 }
  0x7b   : > { %v3008_v44 = vld [vmem:[%s4463_s6 + $0x168] sm:$0xf]  ;;  %v2913_v45 = vor.u32 %v3816_v43, %v2912_v42  ;;  %v3840_v46 = vld [vmem:[%s4463_s6 + $0x170] sm:$0xf0]  ;;  %v2900_v53 = vld [vmem:[%s4463_s6 + $0x90] sm:$0xf] }
  0x7c   : > { %v3104_v47 = vld [vmem:[%s4463_s6 + $0x228] sm:$0xf]  ;;  %v3864_v48 = vld [vmem:[%s4463_s6 + $0x230] sm:$0xf0]  ;;  %v3009_v49 = vor.u32 %v3840_v46, %v3008_v44  ;;  %v3813_v55 = vld [vmem:[%s4463_s6 + $0x98] sm:$0xf0] }
  0x7d   : > { %v3105_v50 = vor.u32 %v3864_v48, %v3104_v47  ;;  %v3200_v51 = vld [vmem:[%s4463_s6 + $0x2e8] sm:$0xf]  ;;  %v3888_v52 = vld [vmem:[%s4463_s6 + $0x2f0] sm:$0xf0]  ;;  %2101 = vmatpush.bf16.msra.mxu0 %v2913_v45  ;;  %v2996_v56 = vld [vmem:[%s4463_s6 + $0x150] sm:$0xf]  ;;  %v2901_v58 = vor.u32 %v3813_v55, %v2900_v53 }
  0x7e   : > { %v3201_v54 = vor.u32 %v3888_v52, %v3200_v51  ;;  %v3837_v57 = vld [vmem:[%s4463_s6 + $0x158] sm:$0xf0]  ;;  %2114 = vmatpush.bf16.msra.mxu1 %v3009_v49  ;;  %v3092_v60 = vld [vmem:[%s4463_s6 + $0x210] sm:$0xf]  ;;  %v2888_v1 = vld [vmem:[%s4463_s6 + $0x78] sm:$0xf] }
  0x7f   : > { %2127 = vmatpush.bf16.msra.mxu2 %v3105_v50  ;;  %v2997_v59 = vor.u32 %v3837_v57, %v2996_v56  ;;  %v3861_v61 = vld [vmem:[%s4463_s6 + $0x218] sm:$0xf0]  ;;  %v3188_v62 = vld [vmem:[%s4463_s6 + $0x2d0] sm:$0xf]  ;;  %v3810_v2 = vld [vmem:[%s4463_s6 + $0x80] sm:$0xf0] }
  0x80   : > { %2140 = vmatpush.bf16.msra.mxu3 %v3201_v54  ;;  %v3093_v63 = vor.u32 %v3861_v61, %v3092_v60  ;;  %v3885_v0 = vld [vmem:[%s4463_s6 + $0x2d8] sm:$0xf0]  ;;  %v2984_v4 = vld [vmem:[%s4463_s6 + $0x138] sm:$0xf]  ;;  %v3834_v5 = vld [vmem:[%s4463_s6 + $0x140] sm:$0xf0]  ;;  %v2889_v7 = vor.u32 %v3810_v2, %v2888_v1 }
  0x81   : > { %v3189_v3 = vor.u32 %v3885_v0, %v3188_v62  ;;  %v3080_v6 = vld [vmem:[%s4463_s6 + $0x1f8] sm:$0xf]  ;;  %2102 = vmatpush.bf16.msra.mxu0 %v2901_v58  ;;  %v3858_v8 = vld [vmem:[%s4463_s6 + $0x200] sm:$0xf0]  ;;  %v2985_v11 = vor.u32 %v3834_v5, %v2984_v4  ;;  %v2876_v13 = vld [vmem:[%s4463_s6 + $0x60] sm:$0xf] }
  0x82   : > { %v3176_v9 = vld [vmem:[%s4463_s6 + $0x2b8] sm:$0xf]  ;;  %v3882_v10 = vld [vmem:[%s4463_s6 + $0x2c0] sm:$0xf0]  ;;  %2115 = vmatpush.bf16.msra.mxu1 %v2997_v59  ;;  %v3081_v12 = vor.u32 %v3858_v8, %v3080_v6  ;;  %v3807_v14 = vld [vmem:[%s4463_s6 + $0x68] sm:$0xf0] }
  0x83   : > { %2128 = vmatpush.bf16.msra.mxu2 %v3093_v63  ;;  %v2972_v15 = vld [vmem:[%s4463_s6 + $0x120] sm:$0xf]  ;;  %v3177_v16 = vor.u32 %v3882_v10, %v3176_v9  ;;  %v3831_v17 = vld [vmem:[%s4463_s6 + $0x128] sm:$0xf0]  ;;  %v2877_v22 = vor.u32 %v3807_v14, %v2876_v13  ;;  %v2864_v25 = vld [vmem:[%s4463_s6 + $0x48] sm:$0xf] }
  0x84   : > { %2141 = vmatpush.bf16.msra.mxu3 %v3189_v3  ;;  %v3068_v18 = vld [vmem:[%s4463_s6 + $0x1e0] sm:$0xf]  ;;  %v3855_v19 = vld [vmem:[%s4463_s6 + $0x1e8] sm:$0xf0]  ;;  %v2973_v23 = vor.u32 %v3831_v17, %v2972_v15  ;;  %v3804_v26 = vld [vmem:[%s4463_s6 + $0x50] sm:$0xf0] }
  0x85   : > { %v3164_v20 = vld [vmem:[%s4463_s6 + $0x2a0] sm:$0xf]  ;;  %v3879_v21 = vld [vmem:[%s4463_s6 + $0x2a8] sm:$0xf0]  ;;  %2103 = vmatpush.bf16.msra.mxu0 %v2889_v7  ;;  %v3069_v24 = vor.u32 %v3855_v19, %v3068_v18  ;;  %v2960_v27 = vld [vmem:[%s4463_s6 + $0x108] sm:$0xf]  ;;  %v2865_v34 = vor.u32 %v3804_v26, %v2864_v25 }
  0x86   : > { %2116 = vmatpush.bf16.msra.mxu1 %v2985_v11  ;;  %v3165_v28 = vor.u32 %v3879_v21, %v3164_v20  ;;  %v3828_v29 = vld [vmem:[%s4463_s6 + $0x110] sm:$0xf0]  ;;  %v3056_v30 = vld [vmem:[%s4463_s6 + $0x1c8] sm:$0xf]  ;;  %v2852_v37 = vld [vmem:[%s4463_s6 + $0x30] sm:$0xf] }
  0x87   : > { %2129 = vmatpush.bf16.msra.mxu2 %v3081_v12  ;;  %v3852_v31 = vld [vmem:[%s4463_s6 + $0x1d0] sm:$0xf0]  ;;  %v3152_v32 = vld [vmem:[%s4463_s6 + $0x288] sm:$0xf]  ;;  %v2961_v35 = vor.u32 %v3828_v29, %v2960_v27  ;;  %v3801_v38 = vld [vmem:[%s4463_s6 + $0x38] sm:$0xf0] }
  0x88   : > { %2142 = vmatpush.bf16.msra.mxu3 %v3177_v16  ;;  %v3876_v33 = vld [vmem:[%s4463_s6 + $0x290] sm:$0xf0]  ;;  %v3057_v36 = vor.u32 %v3852_v31, %v3056_v30  ;;  %v2948_v39 = vld [vmem:[%s4463_s6 + $0xf0] sm:$0xf]  ;;  %v3825_v41 = vld [vmem:[%s4463_s6 + $0xf8] sm:$0xf0]  ;;  %v2853_v46 = vor.u32 %v3801_v38, %v2852_v37 }
  0x89   : > { %2104 = vmatpush.bf16.msra.mxu0 %v2877_v22  ;;  %v3153_v40 = vor.u32 %v3876_v33, %v3152_v32  ;;  %v3044_v42 = vld [vmem:[%s4463_s6 + $0x1b0] sm:$0xf]  ;;  %v3849_v43 = vld [vmem:[%s4463_s6 + $0x1b8] sm:$0xf0]  ;;  %v2949_v47 = vor.u32 %v3825_v41, %v2948_v39  ;;  %v2840_v49 = vld [vmem:[%s4463_s6 + $0x18] sm:$0xf] }
  0x8a   : > { %2117 = vmatpush.bf16.msra.mxu1 %v2973_v23  ;;  %v3140_v44 = vld [vmem:[%s4463_s6 + $0x270] sm:$0xf]  ;;  %v3873_v45 = vld [vmem:[%s4463_s6 + $0x278] sm:$0xf0]  ;;  %v3045_v48 = vor.u32 %v3849_v43, %v3044_v42  ;;  %v3798_v50 = vld [vmem:[%s4463_s6 + $0x20] sm:$0xf0] }
  0x8b   : > { %2130 = vmatpush.bf16.msra.mxu2 %v3069_v24  ;;  %v2936_v51 = vld [vmem:[%s4463_s6 + $0xd8] sm:$0xf]  ;;  %v3141_v52 = vor.u32 %v3873_v45, %v3140_v44  ;;  %v3822_v53 = vld [vmem:[%s4463_s6 + $0xe0] sm:$0xf0]  ;;  %v2841_v58 = vor.u32 %v3798_v50, %v2840_v49  ;;  %v2828_v59 = vld [vmem:[%s4463_s6] sm:$0xf] }
  0x8c   : > { %2143 = vmatpush.bf16.msra.mxu3 %v3165_v28  ;;  %v3032_v54 = vld [vmem:[%s4463_s6 + $0x198] sm:$0xf]  ;;  %v3846_v55 = vld [vmem:[%s4463_s6 + $0x1a0] sm:$0xf0]  ;;  %v3795_v60 = vld [vmem:[%s4463_s6 + $0x8] sm:$0xf0]  ;;  %v2937_v61 = vor.u32 %v3822_v53, %v2936_v51 }
  0x8d   : > { %2105 = vmatpush.bf16.msra.mxu0 %v2865_v34  ;;  %v3128_v56 = vld [vmem:[%s4463_s6 + $0x258] sm:$0xf]  ;;  %v3870_v57 = vld [vmem:[%s4463_s6 + $0x260] sm:$0xf0]  ;;  %v3033_v62 = vor.u32 %v3846_v55, %v3032_v54  ;;  %v2924_v63 = vld [vmem:[%s4463_s6 + $0xc0] sm:$0xf]  ;;  %v2829_v9 = vor.u32 %v3795_v60, %v2828_v59 }
  0x8e   : > { %2118 = vmatpush.bf16.msra.mxu1 %v2961_v35  ;;  %v3819_v0 = vld [vmem:[%s4463_s6 + $0xc8] sm:$0xf0]  ;;  %v3020_v1 = vld [vmem:[%s4463_s6 + $0x180] sm:$0xf]  ;;  %v3129_v2 = vor.u32 %v3870_v57, %v3128_v56  ;;  %v3296_v4 = vld [vmem:[%s4463_s6 + $0x3a8] sm:$0xf] }
  0x8f   : > { %2131 = vmatpush.bf16.msra.mxu2 %v3057_v36  ;;  %v3843_v3 = vld [vmem:[%s4463_s6 + $0x188] sm:$0xf0]  ;;  %v3912_v5 = vld [vmem:[%s4463_s6 + $0x3b0] sm:$0xf0]  ;;  %v3392_v6 = vld [vmem:[%s4463_s6 + $0x468] sm:$0xf]  ;;  %v2925_v13 = vor.u32 %v3819_v0, %v2924_v63 }
  0x90   : > { %2144 = vmatpush.bf16.msra.mxu3 %v3153_v40  ;;  %v3936_v7 = vld [vmem:[%s4463_s6 + $0x470] sm:$0xf0]  ;;  %v3488_v8 = vld [vmem:[%s4463_s6 + $0x528] sm:$0xf]  ;;  %v3116_v11 = vld [vmem:[%s4463_s6 + $0x240] sm:$0xf]  ;;  %v3021_v14 = vor.u32 %v3843_v3, %v3020_v1  ;;  %v3297_v17 = vor.u32 %v3912_v5, %v3296_v4 }
  0x91   : > { %2106 = vmatpush.bf16.msra.mxu0 %v2853_v46  ;;  %v3960_v10 = vld [vmem:[%s4463_s6 + $0x530] sm:$0xf0]  ;;  %v3867_v12 = vld [vmem:[%s4463_s6 + $0x248] sm:$0xf0]  ;;  %v3584_v15 = vld [vmem:[%s4463_s6 + $0x5e8] sm:$0xf]  ;;  %v3393_v18 = vor.u32 %v3936_v7, %v3392_v6 }
  0x92   : > { %2119 = vmatpush.bf16.msra.mxu1 %v2949_v47  ;;  %v3984_v16 = vld [vmem:[%s4463_s6 + $0x5f0] sm:$0xf0]  ;;  %v3284_v19 = vld [vmem:[%s4463_s6 + $0x390] sm:$0xf]  ;;  %v3909_v20 = vld [vmem:[%s4463_s6 + $0x398] sm:$0xf0]  ;;  %v3489_v22 = vor.u32 %v3960_v10, %v3488_v8  ;;  %v3117_v23 = vor.u32 %v3867_v12, %v3116_v11 }
  0x93   : > { %2132 = vmatpush.bf16.msra.mxu2 %v3045_v48  ;;  %v3380_v21 = vld [vmem:[%s4463_s6 + $0x450] sm:$0xf]  ;;  %v3933_v24 = vld [vmem:[%s4463_s6 + $0x458] sm:$0xf0]  ;;  %v3585_v27 = vor.u32 %v3984_v16, %v3584_v15  ;;  %v4550_v30 = vld [vmem:[%s4463_s6 + $0x378] sm:$0xf]  ;;  %v3285_v34 = vor.u32 %v3909_v20, %v3284_v19 }
  0x94   : > { %2145 = vmatpush.bf16.msra.mxu3 %v3141_v52  ;;  %v3476_v25 = vld [vmem:[%s4463_s6 + $0x510] sm:$0xf]  ;;  %v3957_v26 = vld [vmem:[%s4463_s6 + $0x518] sm:$0xf0]  ;;  %v4553_v31 = vld [vmem:[%s4463_s6 + $0x380] sm:$0xf0]  ;;  %v3381_v35 = vor.u32 %v3933_v24, %v3380_v21 }
  0x95   : > { %2107 = vmatpush.bf16.msra.mxu0 %v2841_v58  ;;  %v3572_v28 = vld [vmem:[%s4463_s6 + $0x5d0] sm:$0xf]  ;;  %v3981_v29 = vld [vmem:[%s4463_s6 + $0x5d8] sm:$0xf0]  ;;  %v4556_v32 = vld [vmem:[%s4463_s6 + $0x438] sm:$0xf]  ;;  %v3477_v36 = vor.u32 %v3957_v26, %v3476_v25  ;;  %v3273_v47 = vor.u32 %v4553_v31, %v4550_v30 }
  0x96   : > { %2120 = vmatpush.bf16.msra.mxu1 %v2937_v61  ;;  %v3930_v33 = vld [vmem:[%s4463_s6 + $0x440] sm:$0xf0]  ;;  %v4560_v37 = vld [vmem:[%s4463_s6 + $0x4f8] sm:$0xf]  ;;  %v394_v38 = vld [vmem:[#allocation3 + $0x8] sm:$0xff]  ;;  %v3573_v40 = vor.u32 %v3981_v29, %v3572_v28  ;;  %s355_s7 = scalar_lea.vmem [#allocation7], %s4040_s25 }
  0x97   : > { %2133 = vmatpush.bf16.msra.mxu2 %v3033_v62  ;;  %v399_v39 = vld [vmem:[#allocation3 + $0x30] sm:$0xff]  ;;  %v3954_v41 = vld [vmem:[%s4463_s6 + $0x500] sm:$0xf0]  ;;  %v404_v42 = vld [vmem:[#allocation3 + $0x58] sm:$0xff]  ;;  %v415_v44 = vunpack.c.l.bf16 %v394_v38  ;;  %v416_v46 = vunpack.c.h.bf16 %v394_v38  ;;  %v3369_v61 = vor.u32 %v3930_v33, %v4556_v32  ;;  %s4999_s13 = scalar_lea.vmem [#allocation8], %s4038_s5  ;;  %s4034_s14 = smul.u32 (%p4298_p10), 24, %s4269_s19 }
  0x98   : > { %2146 = vmatpush.bf16.msra.mxu3 %v3129_v2  ;;  %v409_v43 = vld [vmem:[#allocation3 + $0x80] sm:$0xff]  ;;  %v425_v45 = vunpack.c.l.bf16 %v399_v39  ;;  %v3560_v48 = vld [vmem:[%s4463_s6 + $0x5b8] sm:$0xf]  ;;  %v435_v49 = vunpack.c.l.bf16 %v404_v42  ;;  %v398_v51 = vld [vmem:[#allocation3 + $0x28] sm:$0xff]  ;;  %v426_v52 = vunpack.c.h.bf16 %v399_v39  ;;  %v436_v53 = vunpack.c.h.bf16 %v404_v42 }
  0x99   : > { %2108 = vmatpush.bf16.msra.mxu0 %v2829_v9  ;;  %v393_v50 = vld [vmem:[#allocation3] sm:$0xff]  ;;  %v445_v55 = vunpack.c.l.bf16 %v409_v43  ;;  %v403_v57 = vld [vmem:[#allocation3 + $0x50] sm:$0xff]  ;;  %v4567_v58 = vld [vmem:[#allocation3 + $0x78] sm:$0xff]  ;;  %v423_v60 = vunpack.c.l.bf16 %v398_v51  ;;  %v446_v1 = vunpack.c.h.bf16 %v409_v43  ;;  %v3465_v3 = vor.u32 %v3954_v41, %v4560_v37  ;;  %s5169_s15 = scalar_lea.vmem (%p4298_p10), %s5270_s4, %s4034_s14 }
  0x9a   : > { %2121 = vmatpush.bf16.msra.mxu1 %v2925_v13  ;;  %v3978_v54 = vld [vmem:[%s4463_s6 + $0x5c0] sm:$0xf0]  ;;  %v459_v56 = vmax.f32 %v415_v44, %v425_v45  ;;  %v413_v59 = vunpack.c.l.bf16 %v393_v50  ;;  %v3260_v62 = vld [vmem:[%s4463_s6 + $0x360] sm:$0xf]  ;;  %v3903_v63 = vld [vmem:[%s4463_s6 + $0x368] sm:$0xf0]  ;;  %v433_v0 = vunpack.c.l.bf16 %v403_v57  ;;  %v462_v2 = vmax.f32 %v416_v46, %v426_v52 }
  0x9b   : > { %2134 = vmatpush.bf16.msra.mxu2 %v3021_v14  ;;  %v3356_v4 = vld [vmem:[%s4463_s6 + $0x420] sm:$0xf]  ;;  %v3927_v5 = vld [vmem:[%s4463_s6 + $0x428] sm:$0xf0]  ;;  %v443_v7 = vunpack.c.l.bf16 %v4567_v58  ;;  %v3561_v9 = vor.u32 %v3978_v54, %v3560_v48  ;;  %v414_v13 = vunpack.c.h.bf16 %v393_v50  ;;  %v424_v14 = vunpack.c.h.bf16 %v398_v51  ;;  %v3344_v28 = vld [vmem:[%s4463_s6 + $0x408] sm:$0xf] }
  0x9c   : > { %2147 = vmatpush.bf16.msra.mxu3 %v3117_v23  ;;  %v460_v6 = vmax.f32 %v459_v56, %v435_v49  ;;  %v453_v8 = vmax.f32 %v413_v59, %v423_v60  ;;  %v3452_v10 = vld [vmem:[%s4463_s6 + $0x4e0] sm:$0xf]  ;;  %v3951_v11 = vld [vmem:[%s4463_s6 + $0x4e8] sm:$0xf0]  ;;  %v463_v12 = vmax.f32 %v462_v2, %v436_v53  ;;  %v3261_v15 = vor.u32 %v3903_v63, %v3260_v62  ;;  %v3900_v23 = vld [vmem:[%s4463_s6 + $0x350] sm:$0xf0] }
  0x9d   : > { %2153 = vmatpush.bf16.msrb.mxu0 %v3297_v17  ;;  %v3548_v16 = vld [vmem:[%s4463_s6 + $0x5a0] sm:$0xf]  ;;  %v3975_v17 = vld [vmem:[%s4463_s6 + $0x5a8] sm:$0xf0]  ;;  %v434_v20 = vunpack.c.h.bf16 %v403_v57  ;;  %v3357_v21 = vor.u32 %v3927_v5, %v3356_v4  ;;  %v444_v25 = vunpack.c.h.bf16 %v4567_v58  ;;  %v456_v26 = vmax.f32 %v414_v13, %v424_v14  ;;  %v3924_v29 = vld [vmem:[%s4463_s6 + $0x410] sm:$0xf0] }
  0x9e   : > { %2166 = vmatpush.bf16.msrb.mxu1 %v3393_v18  ;;  %v461_v18 = vmax.f32 %v460_v6, %v445_v55  ;;  %v454_v19 = vmax.f32 %v453_v8, %v433_v0  ;;  %v464_v24 = vmax.f32 %v463_v12, %v446_v1  ;;  %v3440_v31 = vld [vmem:[%s4463_s6 + $0x4c8] sm:$0xf]  ;;  %v3549_v33 = vor.u32 %v3975_v17, %v3548_v16  ;;  %v3897_v41 = vld [vmem:[%s4463_s6 + $0x338] sm:$0xf0]  ;;  %v3332_v42 = vld [vmem:[%s4463_s6 + $0x3f0] sm:$0xf] }
  0x9f   : > { %2179 = vmatpush.bf16.msrb.mxu2 %v3489_v22  ;;  %v3248_v22 = vld [vmem:[%s4463_s6 + $0x348] sm:$0xf]  ;;  %v457_v37 = vmax.f32 %v456_v26, %v434_v20  ;;  %v3345_v44 = vor.u32 %v3924_v29, %v3344_v28  ;;  %v3921_v45 = vld [vmem:[%s4463_s6 + $0x3f8] sm:$0xf0]  ;;  %v3524_v50 = vld [vmem:[%s4463_s6 + $0x570] sm:$0xf] }
  0xa0   : > { %2192 = vmatpush.bf16.msrb.mxu3 %v3585_v27  ;;  %v3453_v27 = vor.u32 %v3951_v11, %v3452_v10  ;;  %v4585_v30 = vpack.c.bf16 %v461_v18, %v461_v18  ;;  %v455_v32 = vmax.f32 %v454_v19, %v443_v7  ;;  %v4594_v39 = vpack.c.bf16 %v464_v24, %v464_v24  ;;  %v3945_v48 = vld [vmem:[%s4463_s6 + $0x4b8] sm:$0xf0]  ;;  %v4606_v52 = vld [vmem:[%s4463_s6 + $0x318] sm:$0xf]  ;;  %v4611_v55 = vld [vmem:[%s4463_s6 + $0x320] sm:$0xf0] }
  0xa1   : > { %2154 = vmatpush.bf16.msrb.mxu0 %v3285_v34  ;;  %v3948_v34 = vld [vmem:[%s4463_s6 + $0x4d0] sm:$0xf0]  ;;  %v3249_v43 = vor.u32 %v3900_v23, %v3248_v22  ;;  %v458_v46 = vmax.f32 %v457_v37, %v444_v25  ;;  %v3969_v51 = vld [vmem:[%s4463_s6 + $0x578] sm:$0xf0]  ;;  %v4614_v56 = vld [vmem:[%s4463_s6 + $0x3d8] sm:$0xf]  ;;  %v3333_v59 = vor.u32 %v3921_v45, %v3332_v42 }
  0xa2   : > { %2167 = vmatpush.bf16.msrb.mxu1 %v3381_v35  ;;  %v3536_v35 = vld [vmem:[%s4463_s6 + $0x588] sm:$0xf]  ;;  %2135 = vmatmul.bf16.vlgmr.msra.gmra.mxu2 %v4585_v30  ;;  %v4592_v38 = vpack.c.bf16 %v455_v32, %v455_v32  ;;  %v3441_v49 = vor.u32 %v3948_v34, %v3440_v31  ;;  %v4617_v57 = vld [vmem:[%s4463_s6 + $0x3e0] sm:$0xf0]  ;;  %v396_v60 = vld [vmem:[#allocation3 + $0x18] sm:$0xff]  ;;  %v3525_v8 = vor.u32 %v3969_v51, %v3524_v50 }
  0xa3   : > { %2180 = vmatpush.bf16.msrb.mxu2 %v3477_v36  ;;  %v3972_v36 = vld [vmem:[%s4463_s6 + $0x590] sm:$0xf0]  ;;  %v4608_v54 = vpack.c.bf16 %v458_v46, %v458_v46  ;;  %2148 = vmatmul.bf16.vlgmr.msra.gmra.mxu3 %v4594_v39  ;;  %v406_v62 = vld [vmem:[#allocation3 + $0x68] sm:$0xff]  ;;  %v419_v63 = vunpack.c.l.bf16 %v396_v60  ;;  %v420_v2 = vunpack.c.h.bf16 %v396_v60  ;;  %v3416_v4 = vld [vmem:[%s4463_s6 + $0x498] sm:$0xf]  ;;  %v3321_v10 = vor.u32 %v4617_v57, %v4614_v56 }
  0xa4   : > { %2193 = vmatpush.bf16.msrb.mxu3 %v3573_v40  ;;  %v3236_v40 = vld [vmem:[%s4463_s6 + $0x330] sm:$0xf]  ;;  %2109 = vmatmul.bf16.vlgmr.msra.gmra.mxu0 %v4592_v38  ;;  %v3537_v53 = vor.u32 %v3972_v36, %v3536_v35  ;;  %v439_v1 = vunpack.c.l.bf16 %v406_v62  ;;  %v3942_v5 = vld [vmem:[%s4463_s6 + $0x4a0] sm:$0xf0]  ;;  %v3512_v11 = vld [vmem:[%s4463_s6 + $0x558] sm:$0xf]  ;;  %v440_v20 = vunpack.c.h.bf16 %v406_v62 }
  0xa5   : > { %2155 = vmatpush.bf16.msrb.mxu0 %v3273_v47  ;;  %v3428_v47 = vld [vmem:[%s4463_s6 + $0x4b0] sm:$0xf]  ;;  %v3237_v58 = vor.u32 %v3897_v41, %v3236_v40  ;;  %2122 = vmatmul.bf16.vlgmr.msra.gmra.mxu1 %v4608_v54  ;;  %v400_v14 = vld [vmem:[#allocation3 + $0x38] sm:$0xff]  ;;  %v405_v16 = vld [vmem:[#allocation3 + $0x60] sm:$0xff]  ;;  %v3417_v29 = vor.u32 %v3942_v5, %v3416_v4 }
  0xa6   : > { %2168 = vmatpush.bf16.msrb.mxu1 %v3369_v61  ;;  %v401_v61 = vld [vmem:[#allocation3 + $0x40] sm:$0xff]  ;;  %v4623_v6 = vld [vmem:[#allocation3 + $0x90] sm:$0xff]  ;;  %v4631_v17 = vld [vmem:[#allocation3 + $0x88] sm:$0xff]  ;;  %v427_v19 = vunpack.c.l.bf16 %v400_v14  ;;  %v428_v36 = vunpack.c.h.bf16 %v400_v14 }
  0xa7   : > { %2181 = vmatpush.bf16.msrb.mxu2 %v3465_v3  ;;  %v429_v0 = vunpack.c.l.bf16 %v401_v61  ;;  %v3429_v3 = vor.u32 %v3945_v48, %v3428_v47  ;;  %v430_v7 = vunpack.c.h.bf16 %v401_v61  ;;  %v395_v13 = vld [vmem:[#allocation3 + $0x10] sm:$0xff]  ;;  %v3212_v22 = vld [vmem:[%s4463_s6 + $0x300] sm:$0xf]  ;;  %v3891_v23 = vld [vmem:[%s4463_s6 + $0x308] sm:$0xf0]  ;;  %v449_v25 = vunpack.c.l.bf16 %v4623_v6 }
  0xa8   : > { %2194 = vmatpush.bf16.msrb.mxu3 %v3561_v9  ;;  %v3225_v9 = vor.u32 %v4611_v55, %v4606_v52  ;;  %v417_v18 = vunpack.c.l.bf16 %v395_v13  ;;  %v3308_v24 = vld [vmem:[%s4463_s6 + $0x3c0] sm:$0xf]  ;;  %v418_v28 = vunpack.c.h.bf16 %v395_v13  ;;  %v3915_v31 = vld [vmem:[%s4463_s6 + $0x3c8] sm:$0xf0]  ;;  %v447_v34 = vunpack.c.l.bf16 %v4631_v17  ;;  %v3680_v40 = vld [vmem:[%s4463_s6 + $0x6a8] sm:$0xf] }
  0xa9   : > { %2156 = vmatpush.bf16.msrb.mxu0 %v3261_v15  ;;  %v471_v12 = vmax.f32 %v419_v63, %v429_v0  ;;  %v3966_v15 = vld [vmem:[%s4463_s6 + $0x560] sm:$0xf0]  ;;  %v3404_v32 = vld [vmem:[%s4463_s6 + $0x480] sm:$0xf]  ;;  %v4008_v41 = vld [vmem:[%s4463_s6 + $0x6b0] sm:$0xf0]  ;;  %v448_v50 = vunpack.c.h.bf16 %v4631_v17  ;;  %v3213_v52 = vor.u32 %v3891_v23, %v3212_v22 }
  0xaa   : > { %2169 = vmatpush.bf16.msrb.mxu1 %v3357_v21  ;;  %v474_v21 = vmax.f32 %v420_v2, %v430_v7  ;;  %v465_v35 = vmax.f32 %v417_v18, %v427_v19  ;;  %v3513_v37 = vor.u32 %v3966_v15, %v3512_v11  ;;  %v3776_v42 = vld [vmem:[%s4463_s6 + $0x768] sm:$0xf]  ;;  %v4032_v45 = vld [vmem:[%s4463_s6 + $0x770] sm:$0xf0]  ;;  %v3815_v46 = vld [vmem:[%s4463_s6 + $0xac] sm:$0xf]  ;;  %v468_v51 = vmax.f32 %v418_v28, %v428_v36 }
  0xab   : > { %2182 = vmatpush.bf16.msrb.mxu2 %v3453_v27  ;;  %v472_v26 = vmax.f32 %v471_v12, %v439_v1  ;;  %v437_v27 = vunpack.c.l.bf16 %v405_v16  ;;  %v2914_v47 = vld [vmem:[%s4463_s6 + $0xb4] sm:$0xf0]  ;;  %v3500_v55 = vld [vmem:[%s4463_s6 + $0x540] sm:$0xf]  ;;  %v3963_v56 = vld [vmem:[%s4463_s6 + $0x548] sm:$0xf0]  ;;  %v3777_v0 = vor.u32 %v4032_v45, %v3776_v42 }
  0xac   : > { %2195 = vmatpush.bf16.msrb.mxu3 %v3549_v33  ;;  %v3939_v33 = vld [vmem:[%s4463_s6 + $0x488] sm:$0xf0]  ;;  %v3010_v61 = vld [vmem:[%s4463_s6 + $0x174] sm:$0xf0]  ;;  %v2917_v1 = vor.u32 %v3815_v46, %v2914_v47  ;;  %v3668_v2 = vld [vmem:[%s4463_s6 + $0x690] sm:$0xf]  ;;  %v3501_v5 = vor.u32 %v3963_v56, %v3500_v55 }
  0xad   : > { %2157 = vmatpush.bf16.msrb.mxu0 %v3249_v43  ;;  %v450_v43 = vunpack.c.h.bf16 %v4623_v6  ;;  %v466_v48 = vmax.f32 %v465_v35, %v437_v27  ;;  %v473_v57 = vmax.f32 %v472_v26, %v449_v25  ;;  %v3839_v60 = vld [vmem:[%s4463_s6 + $0x16c] sm:$0xf]  ;;  %v3764_v4 = vld [vmem:[%s4463_s6 + $0x750] sm:$0xf]  ;;  %v4029_v6 = vld [vmem:[%s4463_s6 + $0x758] sm:$0xf0] }
  0xae   : > { %2170 = vmatpush.bf16.msrb.mxu1 %v3345_v44  ;;  %v438_v44 = vunpack.c.h.bf16 %v405_v16  ;;  %v3812_v7 = vld [vmem:[%s4463_s6 + $0x94] sm:$0xf]  ;;  %v3013_v12 = vor.u32 %v3839_v60, %v3010_v61  ;;  %v2998_v16 = vld [vmem:[%s4463_s6 + $0x15c] sm:$0xf0]  ;;  %v3765_v18 = vor.u32 %v4029_v6, %v3764_v4  ;;  %v3752_v22 = vld [vmem:[%s4463_s6 + $0x738] sm:$0xf] }
  0xaf   : > { %2183 = vmatpush.bf16.msrb.mxu2 %v3441_v49  ;;  %v475_v49 = vmax.f32 %v474_v21, %v440_v20  ;;  %v467_v62 = vmax.f32 %v466_v48, %v447_v34  ;;  %v4661_v13 = vpack.c.bf16 %v473_v57, %v473_v57  ;;  %v3836_v15 = vld [vmem:[%s4463_s6 + $0x154] sm:$0xf]  ;;  %v3656_v20 = vld [vmem:[%s4463_s6 + $0x678] sm:$0xf]  ;;  %v4002_v21 = vld [vmem:[%s4463_s6 + $0x680] sm:$0xf0] }
  0xb0   : > { %2196 = vmatpush.bf16.msrb.mxu3 %v3537_v53  ;;  %v3309_v53 = vor.u32 %v3915_v31, %v3308_v24  ;;  %v469_v63 = vmax.f32 %v468_v51, %v438_v44  ;;  %v4026_v24 = vld [vmem:[%s4463_s6 + $0x740] sm:$0xf0]  ;;  %v3809_v25 = vld [vmem:[%s4463_s6 + $0x7c] sm:$0xf]  ;;  %v2890_v26 = vld [vmem:[%s4463_s6 + $0x84] sm:$0xf0]  ;;  %v3001_v27 = vor.u32 %v3836_v15, %v2998_v16  ;;  %v3657_v28 = vor.u32 %v4002_v21, %v3656_v20 }
  0xb1   : > { %2158 = vmatpush.bf16.msrb.mxu0 %v3237_v58  ;;  %v3405_v58 = vor.u32 %v3939_v33, %v3404_v32  ;;  %v2986_v31 = vld [vmem:[%s4463_s6 + $0x144] sm:$0xf0]  ;;  %v3753_v32 = vor.u32 %v4026_v24, %v3752_v22  ;;  %v2893_v33 = vor.u32 %v3809_v25, %v2890_v26  ;;  %v3644_v34 = vld [vmem:[%s4463_s6 + $0x660] sm:$0xf]  ;;  %v3999_v35 = vld [vmem:[%s4463_s6 + $0x668] sm:$0xf0] }
  0xb2   : > { %2171 = vmatpush.bf16.msrb.mxu1 %v3333_v59  ;;  %v3681_v59 = vor.u32 %v4008_v41, %v3680_v40  ;;  %v470_v11 = vmax.f32 %v469_v63, %v448_v50  ;;  %v3740_v36 = vld [vmem:[%s4463_s6 + $0x720] sm:$0xf]  ;;  %v3806_v40 = vld [vmem:[%s4463_s6 + $0x64] sm:$0xf]  ;;  %v2878_v41 = vld [vmem:[%s4463_s6 + $0x6c] sm:$0xf0]  ;;  %v3645_v44 = vor.u32 %v3999_v35, %v3644_v34 }
  0xb3   : > { %2184 = vmatpush.bf16.msrb.mxu2 %v3429_v3  ;;  %v4005_v3 = vld [vmem:[%s4463_s6 + $0x698] sm:$0xf0]  ;;  %v2974_v45 = vld [vmem:[%s4463_s6 + $0x12c] sm:$0xf0]  ;;  %v3632_v46 = vld [vmem:[%s4463_s6 + $0x648] sm:$0xf] }
  0xb4   : > { %2197 = vmatpush.bf16.msrb.mxu3 %v3525_v8  ;;  %v2902_v8 = vld [vmem:[%s4463_s6 + $0x9c] sm:$0xf0]  ;;  %v3669_v14 = vor.u32 %v4005_v3, %v3668_v2  ;;  %v4665_v17 = vpack.c.bf16 %v470_v11, %v470_v11  ;;  %v3996_v50 = vld [vmem:[%s4463_s6 + $0x650] sm:$0xf0]  ;;  %v3728_v51 = vld [vmem:[%s4463_s6 + $0x708] sm:$0xf] }
  0xb5   : > { %2159 = vmatpush.bf16.msrb.mxu0 %v3225_v9  ;;  %v4659_v9 = vpack.c.bf16 %v467_v62, %v467_v62  ;;  %v2905_v19 = vor.u32 %v3812_v7, %v2902_v8  ;;  %v397_v47 = vld [vmem:[#allocation3 + $0x20] sm:$0xff]  ;;  %v3803_v55 = vld [vmem:[%s4463_s6 + $0x4c] sm:$0xf]  ;;  %v2866_v56 = vld [vmem:[%s4463_s6 + $0x54] sm:$0xf0]  ;;  %v3633_v60 = vor.u32 %v3996_v50, %v3632_v46 }
  0xb6   : > { %2172 = vmatpush.bf16.msrb.mxu1 %v3321_v10  ;;  %v476_v10 = vmax.f32 %v475_v49, %v450_v43  ;;  %v3830_v43 = vld [vmem:[%s4463_s6 + $0x124] sm:$0xf]  ;;  %v2881_v49 = vor.u32 %v3806_v40, %v2878_v41  ;;  %v3827_v61 = vld [vmem:[%s4463_s6 + $0x10c] sm:$0xf]  ;;  %v2962_v62 = vld [vmem:[%s4463_s6 + $0x114] sm:$0xf0]  ;;  %v2869_v3 = vor.u32 %v3803_v55, %v2866_v56 }
  0xb7   : > { %2185 = vmatpush.bf16.msrb.mxu2 %v3417_v29  ;;  %v3833_v29 = vld [vmem:[%s4463_s6 + $0x13c] sm:$0xf]  ;;  %v2977_v57 = vor.u32 %v3830_v43, %v2974_v45  ;;  %v407_v63 = vld [vmem:[#allocation3 + $0x70] sm:$0xff]  ;;  %v2965_v11 = vor.u32 %v3827_v61, %v2962_v62  ;;  %v3608_v25 = vld [vmem:[%s4463_s6 + $0x618] sm:$0xf] }
  0xb8   : > { %2198 = vmatpush.bf16.msrb.mxu3 %v3513_v37  ;;  %v4671_v23 = vpack.c.bf16 %v476_v10, %v476_v10  ;;  %v4023_v37 = vld [vmem:[%s4463_s6 + $0x728] sm:$0xf0]  ;;  %v2989_v42 = vor.u32 %v3833_v29, %v2986_v31  ;;  %v3620_v4 = vld [vmem:[%s4463_s6 + $0x630] sm:$0xf]  ;;  %v4017_v7 = vld [vmem:[%s4463_s6 + $0x6f8] sm:$0xf0]  ;;  %v442_v20 = vunpack.c.h.bf16 %v407_v63 }
  0xb9   : > { %2160 = vmatpush.bf16.msrb.mxu0 %v3213_v52  ;;  %v3741_v48 = vor.u32 %v4023_v37, %v3740_v36  ;;  %v402_v52 = vld [vmem:[#allocation3 + $0x48] sm:$0xff]  ;;  %v3716_v6 = vld [vmem:[%s4463_s6 + $0x6f0] sm:$0xf]  ;;  %v3800_v8 = vld [vmem:[%s4463_s6 + $0x34] sm:$0xf] }
  0xba   : > { %2173 = vmatpush.bf16.msrb.mxu1 %v3309_v53  ;;  %v4020_v53 = vld [vmem:[%s4463_s6 + $0x710] sm:$0xf0]  ;;  %v2854_v10 = vld [vmem:[%s4463_s6 + $0x3c] sm:$0xf0]  ;;  %v3717_v22 = vor.u32 %v4017_v7, %v3716_v6  ;;  %v3990_v26 = vld [vmem:[%s4463_s6 + $0x620] sm:$0xf0] }
  0xbb   : > { %2186 = vmatpush.bf16.msrb.mxu2 %v3405_v58  ;;  %v421_v58 = vunpack.c.l.bf16 %v397_v47  ;;  %v3729_v2 = vor.u32 %v4020_v53, %v3728_v51  ;;  %v3824_v16 = vld [vmem:[%s4463_s6 + $0xf4] sm:$0xf]  ;;  %v2857_v24 = vor.u32 %v3800_v8, %v2854_v10  ;;  %v3797_v29 = vld [vmem:[%s4463_s6 + $0x1c] sm:$0xf]  ;;  %v2842_v31 = vld [vmem:[%s4463_s6 + $0x24] sm:$0xf0]  ;;  %v3609_v35 = vor.u32 %v3990_v26, %v3608_v25 }
  0xbc   : > { %2199 = vmatpush.bf16.msrb.mxu3 %v3501_v5  ;;  %2161 = vmatmul.bf16.vlgmr.msrb.gmra.mxu0 %v4659_v9  ;;  %v3993_v5 = vld [vmem:[%s4463_s6 + $0x638] sm:$0xf0]  ;;  %v2938_v37 = vld [vmem:[%s4463_s6 + $0xe4] sm:$0xf0]  ;;  %v3596_v40 = vld [vmem:[%s4463_s6 + $0x600] sm:$0xf] }
  0xbd   : > { %2205 = vmatpush.bf16.msra.mxu0 %v3681_v59  ;;  %2174 = vmatmul.bf16.vlgmr.msrb.gmra.mxu1 %v4665_v17  ;;  %v431_v59 = vunpack.c.l.bf16 %v402_v52  ;;  %v3621_v15 = vor.u32 %v3993_v5, %v3620_v4  ;;  %v3821_v36 = vld [vmem:[%s4463_s6 + $0xdc] sm:$0xf]  ;;  %v3987_v45 = vld [vmem:[%s4463_s6 + $0x608] sm:$0xf0]  ;;  %v3692_v46 = vld [vmem:[%s4463_s6 + $0x6c0] sm:$0xf] }
  0xbe   : > { %2218 = vmatpush.bf16.msra.mxu1 %v3777_v0  ;;  %2187 = vmatmul.bf16.vlgmr.msrb.gmra.mxu2 %v4661_v13  ;;  %v422_v0 = vunpack.c.h.bf16 %v397_v47  ;;  %v4011_v47 = vld [vmem:[%s4463_s6 + $0x6c8] sm:$0xf0]  ;;  %v2941_v51 = vor.u32 %v3821_v36, %v2938_v37  ;;  %v3202_v55 = vld [vmem:[%s4463_s6 + $0x2f4] sm:$0xf0]  ;;  %v3860_v5 = vld [vmem:[%s4463_s6 + $0x214] sm:$0xf] }
  0xbf   : > { %2231 = vmatpush.bf16.msra.mxu2 %v2917_v1  ;;  %2200 = vmatmul.bf16.vlgmr.msrb.gmra.mxu3 %v4671_v23  ;;  %v432_v1 = vunpack.c.h.bf16 %v402_v52  ;;  %v3863_v50 = vld [vmem:[%s4463_s6 + $0x22c] sm:$0xf]  ;;  %v3106_v52 = vld [vmem:[%s4463_s6 + $0x234] sm:$0xf0]  ;;  %v3693_v61 = vor.u32 %v4011_v47, %v3692_v46  ;;  %v3094_v8 = vld [vmem:[%s4463_s6 + $0x21c] sm:$0xf0] }
  0xc0   : > { %2244 = vmatpush.bf16.msra.mxu3 %v3013_v12  ;;  %v441_v12 = vunpack.c.l.bf16 %v407_v63  ;;  %v3887_v53 = vld [vmem:[%s4463_s6 + $0x2ec] sm:$0xf]  ;;  %v3818_v63 = vld [vmem:[%s4463_s6 + $0xc4] sm:$0xf]  ;;  %v3394_v4 = vld [vmem:[%s4463_s6 + $0x474] sm:$0xf0] }
  0xc1   : > { %2206 = vmatpush.bf16.msra.mxu0 %v3669_v14  ;;  %v477_v14 = vmax.f32 %v421_v58, %v431_v59  ;;  %v480_v21 = vmax.f32 %v422_v0, %v432_v1  ;;  %v3911_v58 = vld [vmem:[%s4463_s6 + $0x3ac] sm:$0xf]  ;;  %v3298_v59 = vld [vmem:[%s4463_s6 + $0x3b4] sm:$0xf0]  ;;  %v2926_v0 = vld [vmem:[%s4463_s6 + $0xcc] sm:$0xf0]  ;;  %v3109_v1 = vor.u32 %v3863_v50, %v3106_v52 }
  0xc2   : > { %2219 = vmatpush.bf16.msra.mxu1 %v3765_v18  ;;  %v2950_v18 = vld [vmem:[%s4463_s6 + $0xfc] sm:$0xf0]  ;;  %v3301_v6 = vor.u32 %v3911_v58, %v3298_v59  ;;  %v3884_v10 = vld [vmem:[%s4463_s6 + $0x2d4] sm:$0xf]  ;;  %v3082_v26 = vld [vmem:[%s4463_s6 + $0x204] sm:$0xf0] }
  0xc3   : > { %2232 = vmatpush.bf16.msra.mxu2 %v2905_v19  ;;  %v412_v19 = vld [vmem:[#allocation3 + $0x98] sm:$0xff]  ;;  %v478_v34 = vmax.f32 %v477_v14, %v441_v12  ;;  %v2929_v12 = vor.u32 %v3818_v63, %v2926_v0  ;;  %v3370_v36 = vld [vmem:[%s4463_s6 + $0x444] sm:$0xf0]  ;;  %v3854_v37 = vld [vmem:[%s4463_s6 + $0x1e4] sm:$0xf] }
  0xc4   : > { %2245 = vmatpush.bf16.msra.mxu3 %v3001_v27  ;;  %v3704_v27 = vld [vmem:[%s4463_s6 + $0x6d8] sm:$0xf]  ;;  %v452_v41 = vunpack.c.h.bf16 %v412_v19  ;;  %v3358_v50 = vld [vmem:[%s4463_s6 + $0x42c] sm:$0xf0]  ;;  %v3848_v0 = vld [vmem:[%s4463_s6 + $0x1b4] sm:$0xf] }
  0xc5   : > { %2207 = vmatpush.bf16.msra.mxu0 %v3657_v28  ;;  %v4014_v28 = vld [vmem:[%s4463_s6 + $0x6e0] sm:$0xf0]  ;;  %v3250_v58 = vld [vmem:[%s4463_s6 + $0x354] sm:$0xf0] }
  0xc6   : > { %2220 = vmatpush.bf16.msra.mxu1 %v3753_v32  ;;  %v2953_v32 = vor.u32 %v3824_v16, %v2950_v18  ;;  %v3705_v43 = vor.u32 %v4014_v28, %v3704_v27  ;;  %v3286_v16 = vld [vmem:[%s4463_s6 + $0x39c] sm:$0xf0]  ;;  %v3881_v27 = vld [vmem:[%s4463_s6 + $0x2bc] sm:$0xf]  ;;  %v3178_v28 = vld [vmem:[%s4463_s6 + $0x2c4] sm:$0xf0] }
  0xc7   : > { %2233 = vmatpush.bf16.msra.mxu2 %v2893_v33  ;;  %v451_v33 = vunpack.c.l.bf16 %v412_v19  ;;  %v3097_v19 = vor.u32 %v3860_v5, %v3094_v8  ;;  %v3346_v63 = vld [vmem:[%s4463_s6 + $0x414] sm:$0xf0]  ;;  %v3896_v5 = vld [vmem:[%s4463_s6 + $0x334] sm:$0xf] }
  0xc8   : > { %2246 = vmatpush.bf16.msra.mxu3 %v2989_v42  ;;  %v481_v42 = vmax.f32 %v480_v21, %v442_v20  ;;  %v3932_v21 = vld [vmem:[%s4463_s6 + $0x454] sm:$0xf] }
  0xc9   : > { %2208 = vmatpush.bf16.msra.mxu0 %v3645_v44  ;;  %v2845_v44 = vor.u32 %v3797_v29, %v2842_v31  ;;  %v479_v56 = vmax.f32 %v478_v34, %v451_v33  ;;  %v3905_v29 = vld [vmem:[%s4463_s6 + $0x37c] sm:$0xf]  ;;  %v3274_v31 = vld [vmem:[%s4463_s6 + $0x384] sm:$0xf0]  ;;  %v3181_v34 = vor.u32 %v3881_v27, %v3178_v28 }
  0xca   : > { %2221 = vmatpush.bf16.msra.mxu1 %v3741_v48  ;;  %v3794_v48 = vld [vmem:[%s4463_s6 + $0x4] sm:$0xf]  ;;  %v3322_v27 = vld [vmem:[%s4463_s6 + $0x3e4] sm:$0xf0] }
  0xcb   : > { %2234 = vmatpush.bf16.msra.mxu2 %v2881_v49  ;;  %v2830_v49 = vld [vmem:[%s4463_s6 + $0xc] sm:$0xf0]  ;;  %v4730_v7 = vpack.c.bf16 %v479_v56, %v479_v56  ;;  %v3154_v56 = vld [vmem:[%s4463_s6 + $0x294] sm:$0xf0] }
  0xcc   : > { %2247 = vmatpush.bf16.msra.mxu3 %v2977_v57  ;;  %v3597_v57 = vor.u32 %v3987_v45, %v3596_v40  ;;  %v2833_v62 = vor.u32 %v3794_v48, %v2830_v49  ;;  %v3277_v40 = vor.u32 %v3905_v29, %v3274_v31  ;;  %v3262_v45 = vld [vmem:[%s4463_s6 + $0x36c] sm:$0xf0]  ;;  %v3926_v49 = vld [vmem:[%s4463_s6 + $0x424] sm:$0xf] }
  0xcd   : > { %2209 = vmatpush.bf16.msra.mxu0 %v3633_v60  ;;  %v482_v60 = vmax.f32 %v481_v42, %v452_v41  ;;  %v3070_v41 = vld [vmem:[%s4463_s6 + $0x1ec] sm:$0xf0]  ;;  %v3878_v42 = vld [vmem:[%s4463_s6 + $0x2a4] sm:$0xf]  ;;  %v3361_v59 = vor.u32 %v3926_v49, %v3358_v50 }
  0xce   : > { %2222 = vmatpush.bf16.msra.mxu1 %v3729_v2  ;;  %v3205_v2 = vor.u32 %v3887_v53, %v3202_v55  ;;  %v3073_v47 = vor.u32 %v3854_v37, %v3070_v41  ;;  %v3058_v53 = vld [vmem:[%s4463_s6 + $0x1d4] sm:$0xf0]  ;;  %v3875_v55 = vld [vmem:[%s4463_s6 + $0x28c] sm:$0xf]  ;;  %v3842_v31 = vld [vmem:[%s4463_s6 + $0x184] sm:$0xf] }
  0xcf   : > { %2235 = vmatpush.bf16.msra.mxu2 %v2869_v3  ;;  %v3935_v3 = vld [vmem:[%s4463_s6 + $0x46c] sm:$0xf]  ;;  %v4735_v14 = vpack.c.bf16 %v482_v60, %v482_v60  ;;  %v3214_v37 = vld [vmem:[%s4463_s6 + $0x30c] sm:$0xf0]  ;;  %v3490_v41 = vld [vmem:[%s4463_s6 + $0x534] sm:$0xf0] }
  0xd0   : > { %2248 = vmatpush.bf16.msra.mxu3 %v2965_v11  ;;  %v3190_v11 = vld [vmem:[%s4463_s6 + $0x2dc] sm:$0xf0]  ;;  %v3397_v18 = vor.u32 %v3935_v3, %v3394_v4  ;;  %v3872_v3 = vld [vmem:[%s4463_s6 + $0x274] sm:$0xf]  ;;  %v3914_v49 = vld [vmem:[%s4463_s6 + $0x3c4] sm:$0xf] }
  0xd1   : > { %2210 = vmatpush.bf16.msra.mxu0 %v3621_v15  ;;  %v3908_v15 = vld [vmem:[%s4463_s6 + $0x394] sm:$0xf]  ;;  %v3193_v20 = vor.u32 %v3884_v10, %v3190_v11  ;;  %v3142_v4 = vld [vmem:[%s4463_s6 + $0x27c] sm:$0xf0]  ;;  %v3310_v50 = vld [vmem:[%s4463_s6 + $0x3cc] sm:$0xf0] }
  0xd2   : > { %2223 = vmatpush.bf16.msra.mxu1 %v3717_v22  ;;  %v3382_v22 = vld [vmem:[%s4463_s6 + $0x45c] sm:$0xf0]  ;;  %v3289_v25 = vor.u32 %v3908_v15, %v3286_v16  ;;  %v3145_v11 = vor.u32 %v3872_v3, %v3142_v4  ;;  %v3845_v16 = vld [vmem:[%s4463_s6 + $0x19c] sm:$0xf]  ;;  %v4028_v3 = vld [vmem:[%s4463_s6 + $0x754] sm:$0xf] }
  0xd3   : > { %2236 = vmatpush.bf16.msra.mxu2 %v2857_v24  ;;  %v3857_v24 = vld [vmem:[%s4463_s6 + $0x1fc] sm:$0xf]  ;;  %v3334_v15 = vld [vmem:[%s4463_s6 + $0x3fc] sm:$0xf0] }
  0xd4   : > { %2249 = vmatpush.bf16.msra.mxu3 %v2953_v32  ;;  %v3385_v32 = vor.u32 %v3932_v21, %v3382_v22  ;;  %v3085_v33 = vor.u32 %v3857_v24, %v3082_v26  ;;  %v3130_v21 = vld [vmem:[%s4463_s6 + $0x264] sm:$0xf0]  ;;  %v3893_v22 = vld [vmem:[%s4463_s6 + $0x31c] sm:$0xf]  ;;  %v3766_v4 = vld [vmem:[%s4463_s6 + $0x75c] sm:$0xf0] }
  0xd5   : > { %2211 = vmatpush.bf16.msra.mxu0 %v3609_v35  ;;  %v3929_v35 = vld [vmem:[%s4463_s6 + $0x43c] sm:$0xf]  ;;  %v3226_v24 = vld [vmem:[%s4463_s6 + $0x324] sm:$0xf0] }
  0xd6   : > { %2224 = vmatpush.bf16.msra.mxu1 %v3705_v43  ;;  %v3166_v43 = vld [vmem:[%s4463_s6 + $0x2ac] sm:$0xf0]  ;;  %v3373_v46 = vor.u32 %v3929_v35, %v3370_v36  ;;  %v3917_v26 = vld [vmem:[%s4463_s6 + $0x3dc] sm:$0xf]  ;;  %v3890_v36 = vld [vmem:[%s4463_s6 + $0x304] sm:$0xf] }
  0xd7   : > { %2237 = vmatpush.bf16.msra.mxu2 %v2845_v44  ;;  %v3902_v44 = vld [vmem:[%s4463_s6 + $0x364] sm:$0xf]  ;;  %v3169_v48 = vor.u32 %v3878_v42, %v3166_v43  ;;  %v3118_v35 = vld [vmem:[%s4463_s6 + $0x24c] sm:$0xf0]  ;;  %v3983_v42 = vld [vmem:[%s4463_s6 + $0x5ec] sm:$0xf]  ;;  %v3325_v43 = vor.u32 %v3917_v26, %v3322_v27 }
  0xd8   : > { %2250 = vmatpush.bf16.msra.mxu3 %v2941_v51  ;;  %v3851_v51 = vld [vmem:[%s4463_s6 + $0x1cc] sm:$0xf]  ;;  %v3265_v52 = vor.u32 %v3902_v44, %v3262_v45  ;;  %v3586_v44 = vld [vmem:[%s4463_s6 + $0x5f4] sm:$0xf0]  ;;  %v3454_v26 = vld [vmem:[%s4463_s6 + $0x4ec] sm:$0xf0] }
  0xd9   : > { %2212 = vmatpush.bf16.msra.mxu0 %v3597_v57  ;;  %v3899_v57 = vld [vmem:[%s4463_s6 + $0x34c] sm:$0xf]  ;;  %v3061_v60 = vor.u32 %v3851_v51, %v3058_v53  ;;  %v3217_v51 = vor.u32 %v3890_v36, %v3214_v37  ;;  %v3974_v27 = vld [vmem:[%s4463_s6 + $0x5a4] sm:$0xf] }
  0xda   : > { %2225 = vmatpush.bf16.msra.mxu1 %v3693_v61  ;;  %v3157_v61 = vor.u32 %v3875_v55, %v3154_v56  ;;  %v4007_v45 = vld [vmem:[%s4463_s6 + $0x6ac] sm:$0xf]  ;;  %v3778_v55 = vld [vmem:[%s4463_s6 + $0x774] sm:$0xf0]  ;;  %v3589_v56 = vor.u32 %v3983_v42, %v3586_v44 }
  0xdb   : > { %2238 = vmatpush.bf16.msra.mxu2 %v2833_v62  ;;  %v3923_v62 = vld [vmem:[%s4463_s6 + $0x40c] sm:$0xf] }
  0xdc   : > { %2213 = vmatmul.bf16.vlgmr.msra.gmra.mxu0 %v4730_v7  ;;  %2251 = vmatpush.bf16.msra.mxu3 %v2929_v12  ;;  %v3349_v8 = vor.u32 %v3923_v62, %v3346_v63  ;;  %v3920_v12 = vld [vmem:[%s4463_s6 + $0x3f4] sm:$0xf]  ;;  %v4031_v53 = vld [vmem:[%s4463_s6 + $0x76c] sm:$0xf]  ;;  %v3574_v62 = vld [vmem:[%s4463_s6 + $0x5dc] sm:$0xf0] }
  0xdd   : > { %2257 = vmatpush.bf16.msrb.mxu0 %v3109_v1  ;;  %2226 = vmatmul.bf16.vlgmr.msra.gmra.mxu1 %v4735_v14  ;;  %v3253_v1 = vor.u32 %v3899_v57, %v3250_v58  ;;  %v3956_v58 = vld [vmem:[%s4463_s6 + $0x514] sm:$0xf]  ;;  %v3971_v42 = vld [vmem:[%s4463_s6 + $0x58c] sm:$0xf] }
  0xde   : > { %2270 = vmatpush.bf16.msrb.mxu1 %v3205_v2  ;;  %2239 = vmatmul.bf16.vlgmr.msra.gmra.mxu2 %v4592_v38  ;;  %v3046_v2 = vld [vmem:[%s4463_s6 + $0x1bc] sm:$0xf0]  ;;  %v4004_v63 = vld [vmem:[%s4463_s6 + $0x694] sm:$0xf]  ;;  %v3995_v44 = vld [vmem:[%s4463_s6 + $0x64c] sm:$0xf] }
  0xdf   : > { %2283 = vmatpush.bf16.msrb.mxu2 %v3301_v6  ;;  %2252 = vmatmul.bf16.vlgmr.msra.gmra.mxu3 %v4608_v54  ;;  %v3238_v6 = vld [vmem:[%s4463_s6 + $0x33c] sm:$0xf0]  ;;  %v3049_v10 = vor.u32 %v3848_v0, %v3046_v2 }
  0xe0   : > { %2296 = vmatpush.bf16.msrb.mxu3 %v3397_v18  ;;  %v3241_v18 = vor.u32 %v3896_v5, %v3238_v6  ;;  %v3670_v0 = vld [vmem:[%s4463_s6 + $0x69c] sm:$0xf0] }
  0xe1   : > { %2258 = vmatpush.bf16.msrb.mxu0 %v3097_v19  ;;  %v3034_v19 = vld [vmem:[%s4463_s6 + $0x1a4] sm:$0xf0]  ;;  %v3673_v6 = vor.u32 %v4004_v63, %v3670_v0 }
  0xe2   : > { %2271 = vmatpush.bf16.msrb.mxu1 %v3193_v20  ;;  %v3869_v20 = vld [vmem:[%s4463_s6 + $0x25c] sm:$0xf]  ;;  %v3037_v28 = vor.u32 %v3845_v16, %v3034_v19  ;;  %v3658_v16 = vld [vmem:[%s4463_s6 + $0x684] sm:$0xf0] }
  0xe3   : > { %2284 = vmatpush.bf16.msrb.mxu2 %v3289_v25  ;;  %v3337_v25 = vor.u32 %v3920_v12, %v3334_v15  ;;  %v3133_v29 = vor.u32 %v3869_v20, %v3130_v21  ;;  %v3562_v12 = vld [vmem:[%s4463_s6 + $0x5c4] sm:$0xf0]  ;;  %v4001_v15 = vld [vmem:[%s4463_s6 + $0x67c] sm:$0xf] }
  0xe4   : > { %2297 = vmatpush.bf16.msrb.mxu3 %v3385_v32  ;;  %v3022_v32 = vld [vmem:[%s4463_s6 + $0x18c] sm:$0xf0]  ;;  %v4025_v20 = vld [vmem:[%s4463_s6 + $0x73c] sm:$0xf]  ;;  %v3754_v21 = vld [vmem:[%s4463_s6 + $0x744] sm:$0xf0] }
  0xe5   : > { %2259 = vmatpush.bf16.msrb.mxu0 %v3085_v33  ;;  %v3866_v33 = vld [vmem:[%s4463_s6 + $0x244] sm:$0xf] }
  0xe6   : > { %2272 = vmatpush.bf16.msrb.mxu1 %v3181_v34  ;;  %v3229_v34 = vor.u32 %v3893_v22, %v3226_v24  ;;  %v3661_v24 = vor.u32 %v4001_v15, %v3658_v16  ;;  %v3938_v15 = vld [vmem:[%s4463_s6 + $0x484] sm:$0xf]  ;;  %v3406_v16 = vld [vmem:[%s4463_s6 + $0x48c] sm:$0xf0] }
  0xe7   : > { %2285 = vmatpush.bf16.msrb.mxu2 %v3277_v40  ;;  %v3959_v40 = vld [vmem:[%s4463_s6 + $0x52c] sm:$0xf] }
  0xe8   : > { %2298 = vmatpush.bf16.msrb.mxu3 %v3373_v46  ;;  %v3682_v46 = vld [vmem:[%s4463_s6 + $0x6b4] sm:$0xf0] }
  0xe9   : > { %2260 = vmatpush.bf16.msrb.mxu0 %v3073_v47  ;;  %v3025_v47 = vor.u32 %v3842_v31, %v3022_v32  ;;  %v3685_v57 = vor.u32 %v4007_v45, %v3682_v46  ;;  %v3646_v31 = vld [vmem:[%s4463_s6 + $0x66c] sm:$0xf0]  ;;  %v3757_v32 = vor.u32 %v4025_v20, %v3754_v21  ;;  %v3634_v45 = vld [vmem:[%s4463_s6 + $0x654] sm:$0xf0]  ;;  %v3962_v20 = vld [vmem:[%s4463_s6 + $0x544] sm:$0xf] }
  0xea   : > { %2273 = vmatpush.bf16.msrb.mxu1 %v3169_v48  ;;  %v3121_v48 = vor.u32 %v3866_v33, %v3118_v35  ;;  %v3742_v35 = vld [vmem:[%s4463_s6 + $0x72c] sm:$0xf0] }
  0xeb   : > { %2286 = vmatpush.bf16.msrb.mxu2 %v3265_v52  ;;  %v3493_v52 = vor.u32 %v3959_v40, %v3490_v41  ;;  %v3947_v40 = vld [vmem:[%s4463_s6 + $0x4cc] sm:$0xf]  ;;  %v3442_v41 = vld [vmem:[%s4463_s6 + $0x4d4] sm:$0xf0]  ;;  %v3502_v21 = vld [vmem:[%s4463_s6 + $0x54c] sm:$0xf0] }
  0xec   : > { %2299 = vmatpush.bf16.msrb.mxu3 %v3361_v59  ;;  %v3478_v59 = vld [vmem:[%s4463_s6 + $0x51c] sm:$0xf0] }
  0xed   : > { %2261 = vmatpush.bf16.msrb.mxu0 %v3061_v60  ;;  %v3980_v60 = vld [vmem:[%s4463_s6 + $0x5d4] sm:$0xf]  ;;  %v3481_v2 = vor.u32 %v3956_v58, %v3478_v59  ;;  %v3622_v58 = vld [vmem:[%s4463_s6 + $0x63c] sm:$0xf0] }
  0xee   : > { %2274 = vmatpush.bf16.msrb.mxu1 %v3157_v61  ;;  %v3313_v61 = vor.u32 %v3914_v49, %v3310_v50  ;;  %v3577_v5 = vor.u32 %v3980_v60, %v3574_v62  ;;  %v3730_v49 = vld [vmem:[%s4463_s6 + $0x714] sm:$0xf0]  ;;  %v3718_v62 = vld [vmem:[%s4463_s6 + $0x6fc] sm:$0xf0] }
  0xef   : > { %2287 = vmatpush.bf16.msrb.mxu2 %v3253_v1  ;;  %v3781_v1 = vor.u32 %v4031_v53, %v3778_v55  ;;  %v3430_v53 = vld [vmem:[%s4463_s6 + $0x4bc] sm:$0xf0]  ;;  %v3968_v55 = vld [vmem:[%s4463_s6 + $0x574] sm:$0xf] }
  0xf0   : > { %2300 = vmatpush.bf16.msrb.mxu3 %v3349_v8  ;;  %v3953_v8 = vld [vmem:[%s4463_s6 + $0x4fc] sm:$0xf] }
  0xf1   : > { %2262 = vmatpush.bf16.msrb.mxu0 %v3049_v10  ;;  %v3466_v10 = vld [vmem:[%s4463_s6 + $0x504] sm:$0xf0] }
  0xf2   : > { %2275 = vmatpush.bf16.msrb.mxu1 %v3145_v11  ;;  %v3977_v11 = vld [vmem:[%s4463_s6 + $0x5bc] sm:$0xf]  ;;  %v3469_v19 = vor.u32 %v3953_v8, %v3466_v10 }
  0xf3   : > { %2288 = vmatpush.bf16.msrb.mxu2 %v3241_v18  ;;  %v3769_v18 = vor.u32 %v4028_v3, %v3766_v4  ;;  %v3565_v22 = vor.u32 %v3977_v11, %v3562_v12  ;;  %v3965_v3 = vld [vmem:[%s4463_s6 + $0x55c] sm:$0xf]  ;;  %v3514_v4 = vld [vmem:[%s4463_s6 + $0x564] sm:$0xf0] }
  0xf4   : > { %2301 = vmatpush.bf16.msrb.mxu3 %v3337_v25  ;;  %v3950_v25 = vld [vmem:[%s4463_s6 + $0x4e4] sm:$0xf]  ;;  %v4013_v10 = vld [vmem:[%s4463_s6 + $0x6dc] sm:$0xf]  ;;  %v3706_v12 = vld [vmem:[%s4463_s6 + $0x6e4] sm:$0xf0] }
  0xf5   : > { %2263 = vmatpush.bf16.msrb.mxu0 %v3037_v28  ;;  %v3550_v28 = vld [vmem:[%s4463_s6 + $0x5ac] sm:$0xf0]  ;;  %v3457_v33 = vor.u32 %v3950_v25, %v3454_v26  ;;  %v3817_v26 = vld [vmem:[%s4463_s6 + $0xb8] sm:$0xf0] }
  0xf6   : > { %2276 = vmatpush.bf16.msrb.mxu1 %v3133_v29  ;;  %v3998_v29 = vld [vmem:[%s4463_s6 + $0x664] sm:$0xf]  ;;  %v3553_v36 = vor.u32 %v3974_v27, %v3550_v28  ;;  %v2920_v25 = vld [vmem:[%s4463_s6 + $0xb0] sm:$0xf]  ;;  %v3709_v27 = vor.u32 %v4013_v10, %v3706_v12  ;;  %v3808_v10 = vld [vmem:[%s4463_s6 + $0x70] sm:$0xf0] }
  0xf7   : > { %2289 = vmatpush.bf16.msrb.mxu2 %v3229_v34  ;;  %v4022_v34 = vld [vmem:[%s4463_s6 + $0x724] sm:$0xf]  ;;  %v3649_v37 = vor.u32 %v3998_v29, %v3646_v31  ;;  %v3016_v28 = vld [vmem:[%s4463_s6 + $0x170] sm:$0xf]  ;;  %v3841_v29 = vld [vmem:[%s4463_s6 + $0x178] sm:$0xf0] }
  0xf8   : > { %2302 = vmatpush.bf16.msrb.mxu3 %v3325_v43  ;;  %v3538_v43 = vld [vmem:[%s4463_s6 + $0x594] sm:$0xf0]  ;;  %v3745_v46 = vor.u32 %v4022_v34, %v3742_v35  ;;  %v3112_v31 = vld [vmem:[%s4463_s6 + $0x230] sm:$0xf]  ;;  %v4010_v34 = vld [vmem:[%s4463_s6 + $0x6c4] sm:$0xf] }
  0xf9   : > { %2264 = vmatpush.bf16.msrb.mxu0 %v3025_v47  ;;  %v3445_v47 = vor.u32 %v3947_v40, %v3442_v41  ;;  %v3541_v50 = vor.u32 %v3971_v42, %v3538_v43  ;;  %v3694_v35 = vld [vmem:[%s4463_s6 + $0x6cc] sm:$0xf0]  ;;  %v3889_v41 = vld [vmem:[%s4463_s6 + $0x2f8] sm:$0xf0]  ;;  %v2921_v42 = vor.u32 %v3817_v26, %v2920_v25  ;;  %v3017_v43 = vor.u32 %v3841_v29, %v3016_v28  ;;  %v3832_v12 = vld [vmem:[%s4463_s6 + $0x130] sm:$0xf0] }
  0xfa   : > { %2277 = vmatpush.bf16.msrb.mxu1 %v3121_v48  ;;  %v4019_v48 = vld [vmem:[%s4463_s6 + $0x70c] sm:$0xf]  ;;  %v3208_v40 = vld [vmem:[%s4463_s6 + $0x2f0] sm:$0xf]  ;;  %v3805_v26 = vld [vmem:[%s4463_s6 + $0x58] sm:$0xf0] }
  0xfb   : > { %2290 = vmatpush.bf16.msrb.mxu2 %v3217_v51  ;;  %v3637_v51 = vor.u32 %v3995_v44, %v3634_v45  ;;  %v3733_v59 = vor.u32 %v4019_v48, %v3730_v49  ;;  %v2908_v44 = vld [vmem:[%s4463_s6 + $0x98] sm:$0xf]  ;;  %v3838_v49 = vld [vmem:[%s4463_s6 + $0x160] sm:$0xf0]  ;;  %v3829_v28 = vld [vmem:[%s4463_s6 + $0x118] sm:$0xf0] }
  0xfc   : > { %2303 = vmatpush.bf16.msrb.mxu3 %v3313_v61  ;;  %2265 = vmatmul.bf16.vlgmr.msrb.gmra.mxu0 %v4585_v30  ;;  %v4016_v61 = vld [vmem:[%s4463_s6 + $0x6f4] sm:$0xf]  ;;  %v3004_v48 = vld [vmem:[%s4463_s6 + $0x158] sm:$0xf] }
  0xfd   : > { %2309 = vmatpush.bf16.msra.mxu0 %v3493_v52  ;;  %2278 = vmatmul.bf16.vlgmr.msrb.gmra.mxu1 %v4594_v39  ;;  %v3944_v52 = vld [vmem:[%s4463_s6 + $0x4b4] sm:$0xf]  ;;  %v3721_v8 = vor.u32 %v4016_v61, %v3718_v62  ;;  %v2992_v61 = vld [vmem:[%s4463_s6 + $0x140] sm:$0xf]  ;;  %v3835_v62 = vld [vmem:[%s4463_s6 + $0x148] sm:$0xf0] }
  0xfe   : > { %2322 = vmatpush.bf16.msra.mxu1 %v3589_v56  ;;  %2291 = vmatmul.bf16.vlgmr.msrb.gmra.mxu2 %v4659_v9  ;;  %v3526_v56 = vld [vmem:[%s4463_s6 + $0x57c] sm:$0xf0]  ;;  %v3433_v60 = vor.u32 %v3944_v52, %v3430_v53  ;;  %v3862_v52 = vld [vmem:[%s4463_s6 + $0x220] sm:$0xf0]  ;;  %v3196_v53 = vld [vmem:[%s4463_s6 + $0x2d8] sm:$0xf] }
  0xff   : > { %2335 = vmatpush.bf16.msra.mxu2 %v3685_v57  ;;  %2304 = vmatmul.bf16.vlgmr.msrb.gmra.mxu3 %v4665_v17  ;;  %v3992_v57 = vld [vmem:[%s4463_s6 + $0x634] sm:$0xf]  ;;  %v3529_v63 = vor.u32 %v3968_v55, %v3526_v56  ;;  %v3886_v55 = vld [vmem:[%s4463_s6 + $0x2e0] sm:$0xf0] }
 0x100   : > { %2348 = vmatpush.bf16.msra.mxu3 %v3781_v1  ;;  %v3625_v0 = vor.u32 %v3992_v57, %v3622_v58  ;;  %v3941_v1 = vld [vmem:[%s4463_s6 + $0x49c] sm:$0xf]  ;;  %v3005_v57 = vor.u32 %v3838_v49, %v3004_v48  ;;  %v2896_v58 = vld [vmem:[%s4463_s6 + $0x80] sm:$0xf]  ;;  %v3874_v48 = vld [vmem:[%s4463_s6 + $0x280] sm:$0xf0] }
 0x101   : > { %2310 = vmatpush.bf16.msra.mxu0 %v3481_v2  ;;  %v3418_v2 = vld [vmem:[%s4463_s6 + $0x4a4] sm:$0xf0] }
 0x102   : > { %2323 = vmatpush.bf16.msra.mxu1 %v3577_v5  ;;  %v3989_v5 = vld [vmem:[%s4463_s6 + $0x61c] sm:$0xf]  ;;  %v3421_v11 = vor.u32 %v3941_v1, %v3418_v2  ;;  %v3859_v1 = vld [vmem:[%s4463_s6 + $0x208] sm:$0xf0]  ;;  %v3184_v2 = vld [vmem:[%s4463_s6 + $0x2c0] sm:$0xf] }
 0x103   : > { %2336 = vmatpush.bf16.msra.mxu2 %v3673_v6  ;;  %v3610_v6 = vld [vmem:[%s4463_s6 + $0x624] sm:$0xf0] }
 0x104   : > { %2349 = vmatpush.bf16.msra.mxu3 %v3769_v18  ;;  %v3517_v18 = vor.u32 %v3965_v3, %v3514_v4  ;;  %v3883_v3 = vld [vmem:[%s4463_s6 + $0x2c8] sm:$0xf0] }
 0x105   : > { %2311 = vmatpush.bf16.msra.mxu0 %v3469_v19  ;;  %v3613_v19 = vor.u32 %v3989_v5, %v3610_v6  ;;  %v2993_v5 = vor.u32 %v3835_v62, %v2992_v61  ;;  %v2884_v6 = vld [vmem:[%s4463_s6 + $0x68] sm:$0xf]  ;;  %v3871_v61 = vld [vmem:[%s4463_s6 + $0x268] sm:$0xf0] }
 0x106   : > { %2324 = vmatpush.bf16.msra.mxu1 %v3565_v22  ;;  %v3986_v22 = vld [vmem:[%s4463_s6 + $0x604] sm:$0xf] }
 0x107   : > { %2337 = vmatpush.bf16.msra.mxu2 %v3661_v24  ;;  %v3598_v24 = vld [vmem:[%s4463_s6 + $0x60c] sm:$0xf0] }
 0x108   : > { %2350 = vmatpush.bf16.msra.mxu3 %v3757_v32  ;;  %v3409_v32 = vor.u32 %v3938_v15, %v3406_v16  ;;  %v3185_v15 = vor.u32 %v3883_v3, %v3184_v2  ;;  %v3076_v16 = vld [vmem:[%s4463_s6 + $0x1e8] sm:$0xf]  ;;  %v3796_v2 = vld [vmem:[%s4463_s6 + $0x10] sm:$0xf0] }
 0x109   : > { %2312 = vmatpush.bf16.msra.mxu0 %v3457_v33  ;;  %v3865_v33 = vld [vmem:[%s4463_s6 + $0x238] sm:$0xf0]  ;;  %v2932_v3 = vld [vmem:[%s4463_s6 + $0xc8] sm:$0xf] }
 0x10a   : > { %2325 = vmatpush.bf16.msra.mxu1 %v3553_v36  ;;  %v3505_v36 = vor.u32 %v3962_v20, %v3502_v21  ;;  %v3113_v45 = vor.u32 %v3865_v33, %v3112_v31  ;;  %v3880_v20 = vld [vmem:[%s4463_s6 + $0x2b0] sm:$0xf0]  ;;  %v2885_v21 = vor.u32 %v3808_v10, %v2884_v6  ;;  %v3064_v31 = vld [vmem:[%s4463_s6 + $0x1d0] sm:$0xf]  ;;  %v3028_v6 = vld [vmem:[%s4463_s6 + $0x188] sm:$0xf] }
 0x10b   : > { %2338 = vmatpush.bf16.msra.mxu2 %v3649_v37  ;;  %v3601_v37 = vor.u32 %v3986_v22, %v3598_v24  ;;  %v2872_v24 = vld [vmem:[%s4463_s6 + $0x50] sm:$0xf] }
 0x10c   : > { %2351 = vmatpush.bf16.msra.mxu3 %v3745_v46  ;;  %v3697_v46 = vor.u32 %v4010_v34, %v3694_v35  ;;  %v3160_v33 = vld [vmem:[%s4463_s6 + $0x290] sm:$0xf]  ;;  %v3877_v34 = vld [vmem:[%s4463_s6 + $0x298] sm:$0xf0]  ;;  %v2873_v35 = vor.u32 %v3805_v26, %v2872_v24  ;;  %v3124_v24 = vld [vmem:[%s4463_s6 + $0x248] sm:$0xf] }
 0x10d   : > { %2313 = vmatpush.bf16.msra.mxu0 %v3445_v47  ;;  %v3814_v47 = vld [vmem:[%s4463_s6 + $0xa0] sm:$0xf0] }
 0x10e   : > { %2326 = vmatpush.bf16.msra.mxu1 %v3541_v50  ;;  %v3209_v50 = vor.u32 %v3889_v41, %v3208_v40  ;;  %v2909_v56 = vor.u32 %v3814_v47, %v2908_v44  ;;  %v3802_v41 = vld [vmem:[%s4463_s6 + $0x40] sm:$0xf0]  ;;  %v3161_v44 = vor.u32 %v3877_v34, %v3160_v33  ;;  %v3148_v47 = vld [vmem:[%s4463_s6 + $0x278] sm:$0xf] }
 0x10f   : > { %2339 = vmatpush.bf16.msra.mxu2 %v3637_v51  ;;  %v3100_v51 = vld [vmem:[%s4463_s6 + $0x218] sm:$0xf] }
 0x110   : > { %2352 = vmatpush.bf16.msra.mxu3 %v3733_v59  ;;  %v3101_v59 = vor.u32 %v3862_v52, %v3100_v51  ;;  %v2848_v51 = vld [vmem:[%s4463_s6 + $0x20] sm:$0xf]  ;;  %v3292_v34 = vld [vmem:[%s4463_s6 + $0x398] sm:$0xf] }
 0x111   : > { %2314 = vmatpush.bf16.msra.mxu0 %v3433_v60  ;;  %v3811_v60 = vld [vmem:[%s4463_s6 + $0x88] sm:$0xf0] }
 0x112   : > { %2327 = vmatpush.bf16.msra.mxu1 %v3529_v63  ;;  %v3197_v63 = vor.u32 %v3886_v55, %v3196_v53  ;;  %v2897_v4 = vor.u32 %v3811_v60, %v2896_v58  ;;  %v3799_v53 = vld [vmem:[%s4463_s6 + $0x28] sm:$0xf0]  ;;  %v2944_v55 = vld [vmem:[%s4463_s6 + $0xe0] sm:$0xf] }
 0x113   : > { %2340 = vmatpush.bf16.msra.mxu2 %v3625_v0  ;;  %v3088_v0 = vld [vmem:[%s4463_s6 + $0x200] sm:$0xf]  ;;  %v2849_v62 = vor.u32 %v3799_v53, %v2848_v51 }
 0x114   : > { %2353 = vmatpush.bf16.msra.mxu3 %v3721_v8  ;;  %v3089_v8 = vor.u32 %v3859_v1, %v3088_v0  ;;  %v3040_v58 = vld [vmem:[%s4463_s6 + $0x1a0] sm:$0xf]  ;;  %v2836_v1 = vld [vmem:[%s4463_s6 + $0x8] sm:$0xf] }
 0x115   : > { %2315 = vmatpush.bf16.msra.mxu0 %v3421_v11  ;;  %v2980_v11 = vld [vmem:[%s4463_s6 + $0x128] sm:$0xf]  ;;  %v3136_v60 = vld [vmem:[%s4463_s6 + $0x260] sm:$0xf] }
 0x116   : > { %2328 = vmatpush.bf16.msra.mxu1 %v3517_v18  ;;  %v3856_v18 = vld [vmem:[%s4463_s6 + $0x1f0] sm:$0xf0]  ;;  %v2981_v22 = vor.u32 %v3832_v12, %v2980_v11  ;;  %v3137_v10 = vor.u32 %v3871_v61, %v3136_v60  ;;  %v3304_v11 = vld [vmem:[%s4463_s6 + $0x3b0] sm:$0xf]  ;;  %v3913_v12 = vld [vmem:[%s4463_s6 + $0x3b8] sm:$0xf0] }
 0x117   : > { %2341 = vmatpush.bf16.msra.mxu2 %v3613_v19  ;;  %v3172_v19 = vld [vmem:[%s4463_s6 + $0x2a8] sm:$0xf]  ;;  %v3077_v25 = vor.u32 %v3856_v18, %v3076_v16  ;;  %v3937_v16 = vld [vmem:[%s4463_s6 + $0x478] sm:$0xf0]  ;;  %v3496_v18 = vld [vmem:[%s4463_s6 + $0x530] sm:$0xf] }
 0x118   : > { %2354 = vmatpush.bf16.msra.mxu3 %v3709_v27  ;;  %v2968_v27 = vld [vmem:[%s4463_s6 + $0x110] sm:$0xf]  ;;  %v3173_v29 = vor.u32 %v3880_v20, %v3172_v19  ;;  %v3961_v19 = vld [vmem:[%s4463_s6 + $0x538] sm:$0xf0]  ;;  %v2837_v20 = vor.u32 %v3796_v2, %v2836_v1  ;;  %v3280_v51 = vld [vmem:[%s4463_s6 + $0x380] sm:$0xf] }
 0x119   : > { %2316 = vmatpush.bf16.msra.mxu0 %v3409_v32  ;;  %v3853_v32 = vld [vmem:[%s4463_s6 + $0x1d8] sm:$0xf0]  ;;  %v3497_v33 = vor.u32 %v3961_v19, %v3496_v18  ;;  %v3376_v53 = vld [vmem:[%s4463_s6 + $0x440] sm:$0xf]  ;;  %v3256_v18 = vld [vmem:[%s4463_s6 + $0x350] sm:$0xf] }
 0x11a   : > { %2329 = vmatpush.bf16.msra.mxu1 %v3505_v36  ;;  %v2969_v36 = vor.u32 %v3829_v28, %v2968_v27  ;;  %v3065_v40 = vor.u32 %v3853_v32, %v3064_v31  ;;  %v3305_v28 = vor.u32 %v3913_v12, %v3304_v11  ;;  %v3985_v31 = vld [vmem:[%s4463_s6 + $0x5f8] sm:$0xf0]  ;;  %v4964_v61 = vld [vmem:[%s355_s7] sm:$0x7]  ;;  %v3556_v12 = vld [vmem:[%s4463_s6 + $0x5a8] sm:$0xf] }
 0x11b   : > { %2342 = vmatpush.bf16.msra.mxu2 %v3601_v37  ;;  %v2860_v37 = vld [vmem:[%s4463_s6 + $0x38] sm:$0xf]  ;;  %v3901_v19 = vld [vmem:[%s4463_s6 + $0x358] sm:$0xf0] }
 0x11c   : > { %2355 = vmatpush.bf16.msra.mxu3 %v3697_v46  ;;  %2317 = vmatmul.bf16.vlgmr.msra.gmra.mxu0 %v4661_v13  ;;  %v3850_v46 = vld [vmem:[%s4463_s6 + $0x1c0] sm:$0xf0]  ;;  %v2861_v49 = vor.u32 %v3802_v41, %v2860_v37  ;;  %v3484_v41 = vld [vmem:[%s4463_s6 + $0x518] sm:$0xf] }
 0x11d   : > { %2361 = vmatpush.bf16.msrb.mxu0 %v2921_v42  ;;  %2330 = vmatmul.bf16.vlgmr.msra.gmra.mxu1 %v4671_v23  ;;  %v2956_v42 = vld [vmem:[%s4463_s6 + $0xf8] sm:$0xf] }
 0x11e   : > { %2374 = vmatpush.bf16.msrb.mxu1 %v3017_v43  ;;  %2343 = vmatmul.bf16.vlgmr.msra.gmra.mxu2 %v4730_v7  ;;  %v3826_v43 = vld [vmem:[%s4463_s6 + $0x100] sm:$0xf0] }
 0x11f   : > { %2387 = vmatpush.bf16.msrb.mxu2 %v3113_v45  ;;  %2356 = vmatmul.bf16.vlgmr.msra.gmra.mxu3 %v4735_v14  ;;  %v3052_v45 = vld [vmem:[%s4463_s6 + $0x1b8] sm:$0xf] }
 0x120   : > { %2400 = vmatpush.bf16.msrb.mxu3 %v3209_v50  ;;  %v2957_v50 = vor.u32 %v3826_v43, %v2956_v42  ;;  %v3053_v52 = vor.u32 %v3850_v46, %v3052_v45  ;;  %v3958_v42 = vld [vmem:[%s4463_s6 + $0x520] sm:$0xf0] }
 0x121   : > { %2362 = vmatpush.bf16.msrb.mxu0 %v2909_v56  ;;  %v3823_v56 = vld [vmem:[%s4463_s6 + $0xe8] sm:$0xf0]  ;;  %v4921_v0 = vpop.f32.mrf.mxu0 }
 0x122   : > { %2375 = vmatpush.bf16.msrb.mxu1 %v3005_v57  ;;  %v3149_v57 = vor.u32 %v3874_v48, %v3148_v47  ;;  %v3580_v47 = vld [vmem:[%s4463_s6 + $0x5d8] sm:$0xf]  ;;  %v3982_v48 = vld [vmem:[%s4463_s6 + $0x5e0] sm:$0xf0] }
 0x123   : > { %2388 = vmatpush.bf16.msrb.mxu2 %v3101_v59  ;;  %v3847_v59 = vld [vmem:[%s4463_s6 + $0x1a8] sm:$0xf0] }
 0x124   : > { %2401 = vmatpush.bf16.msrb.mxu3 %v3197_v63  ;;  %v2945_v63 = vor.u32 %v3823_v56, %v2944_v55  ;;  %v3931_v55 = vld [vmem:[%s4463_s6 + $0x448] sm:$0xf0]  ;;  %v3472_v56 = vld [vmem:[%s4463_s6 + $0x500] sm:$0xf] }
 0x125   : > { %2363 = vmatpush.bf16.msrb.mxu0 %v2897_v4  ;;  %v3041_v4 = vor.u32 %v3847_v59, %v3040_v58  ;;  %v4939_v26 = vpop.f32.mrf.mxu2  ;;  %v3581_v58 = vor.u32 %v3982_v48, %v3580_v47  ;;  %v3377_v1 = vor.u32 %v3931_v55, %v3376_v53  ;;  %v3970_v53 = vld [vmem:[%s4463_s6 + $0x580] sm:$0xf0]  ;;  %v2496_v55 = vld [vmem:[%s4455_s0 + $0x28] sm:$0xff] }
 0x126   : > { %2376 = vmatpush.bf16.msrb.mxu1 %v2993_v5  ;;  %v3820_v5 = vld [vmem:[%s4463_s6 + $0xd0] sm:$0xf0]  ;;  %2538 = vst [vmem:[%s4999_s13 + $0x28] sm:$0xff] %v2496_v55  ;;  %v4006_v55 = vld [vmem:[%s4463_s6 + $0x6a0] sm:$0xf0] }
 0x127   : > { %2389 = vmatpush.bf16.msrb.mxu2 %v3089_v8  ;;  %v3844_v8 = vld [vmem:[%s4463_s6 + $0x190] sm:$0xf0] }
 0x128   : > { %2402 = vmatpush.bf16.msrb.mxu3 %v3185_v15  ;;  %v3400_v15 = vld [vmem:[%s4463_s6 + $0x470] sm:$0xf]  ;;  %v3029_v27 = vor.u32 %v3844_v8, %v3028_v6  ;;  %v3460_v6 = vld [vmem:[%s4463_s6 + $0x4e8] sm:$0xf]  ;;  %v3952_v8 = vld [vmem:[%s4463_s6 + $0x4f0] sm:$0xf0] }
 0x129   : > { %2364 = vmatpush.bf16.msrb.mxu0 %v2885_v21  ;;  %v2933_v21 = vor.u32 %v3820_v5, %v2932_v3  ;;  %v3401_v32 = vor.u32 %v3937_v16, %v3400_v15  ;;  %v2112_v45 = vpop.f32.mrf.mxu0  ;;  %v3904_v3 = vld [vmem:[%s4463_s6 + $0x370] sm:$0xf0] }
 0x12a   : > { %2377 = vmatpush.bf16.msrb.mxu1 %v2981_v22  ;;  %v4935_v22 = vpop.f32.mrf.mxu1  ;;  %v3928_v5 = vld [vmem:[%s4463_s6 + $0x430] sm:$0xf0]  ;;  %v3922_v45 = vld [vmem:[%s4463_s6 + $0x400] sm:$0xf0] }
 0x12b   : > { %2390 = vmatpush.bf16.msrb.mxu2 %v3077_v25  ;;  %v3868_v25 = vld [vmem:[%s4463_s6 + $0x250] sm:$0xf0] }
 0x12c   : > { %2403 = vmatpush.bf16.msrb.mxu3 %v3173_v29  ;;  %v3592_v29 = vld [vmem:[%s4463_s6 + $0x5f0] sm:$0xf]  ;;  %v3125_v37 = vor.u32 %v3868_v25, %v3124_v24  ;;  %v3976_v15 = vld [vmem:[%s4463_s6 + $0x5b0] sm:$0xf0]  ;;  %v3925_v25 = vld [vmem:[%s4463_s6 + $0x418] sm:$0xf0] }
 0x12d   : > { %2365 = vmatpush.bf16.msrb.mxu0 %v2873_v35  ;;  %v3910_v35 = vld [vmem:[%s4463_s6 + $0x3a0] sm:$0xf0]  ;;  %v3593_v43 = vor.u32 %v3985_v31, %v3592_v29  ;;  %v2138_v60 = vpop.f32.mrf.mxu2  ;;  %v3544_v29 = vld [vmem:[%s4463_s6 + $0x590] sm:$0xf]  ;;  %v3973_v31 = vld [vmem:[%s4463_s6 + $0x598] sm:$0xf0] }
 0x12e   : > { %2378 = vmatpush.bf16.msrb.mxu1 %v2969_v36  ;;  %v3388_v36 = vld [vmem:[%s4463_s6 + $0x458] sm:$0xf]  ;;  %v3293_v46 = vor.u32 %v3910_v35, %v3292_v34  ;;  %v2493_v34 = vld [vmem:[%s4455_s0 + $0x10] sm:$0xff]  ;;  %v3557_v35 = vor.u32 %v3976_v15, %v3556_v12  ;;  %v3220_v12 = vld [vmem:[%s4463_s6 + $0x308] sm:$0xf] }
 0x12f   : > { %2391 = vmatpush.bf16.msrb.mxu2 %v3065_v40  ;;  %v3934_v40 = vld [vmem:[%s4463_s6 + $0x460] sm:$0xf0]  ;;  %2535 = vst [vmem:[%s4999_s13 + $0x10] sm:$0xff] %v2493_v34  ;;  %v3892_v15 = vld [vmem:[%s4463_s6 + $0x310] sm:$0xf0] }
 0x130   : > { %2404 = vmatpush.bf16.msrb.mxu3 %v3161_v44  ;;  %v4950_v44 = vpop.f32.mrf.mxu3  ;;  %v2503_v34 = vld [vmem:[%s4455_s0 + $0x60] sm:$0xff] }
 0x131   : > { %2366 = vmatpush.bf16.msrb.mxu0 %v2861_v49  ;;  %v3389_v49 = vor.u32 %v3934_v40, %v3388_v36  ;;  %v3898_v40 = vld [vmem:[%s4463_s6 + $0x340] sm:$0xf0]  ;;  %2545 = vst [vmem:[%s4999_s13 + $0x60] sm:$0xff] %v2503_v34 }
 0x132   : > { %2379 = vmatpush.bf16.msrb.mxu1 %v2957_v50  ;;  %v3485_v50 = vor.u32 %v3958_v42, %v3484_v41  ;;  %v2125_v59 = vpop.f32.mrf.mxu1  ;;  %v2494_v41 = vld [vmem:[%s4455_s0 + $0x18] sm:$0xff]  ;;  %v3257_v42 = vor.u32 %v3901_v19, %v3256_v18  ;;  %v2501_v18 = vld [vmem:[%s4455_s0 + $0x50] sm:$0xff] }
 0x133   : > { %2392 = vmatpush.bf16.msrb.mxu2 %v3053_v52  ;;  %v3907_v52 = vld [vmem:[%s4463_s6 + $0x388] sm:$0xf0]  ;;  %2536 = vst [vmem:[%s4999_s13 + $0x18] sm:$0xff] %v2494_v41  ;;  %v3221_v41 = vor.u32 %v3892_v15, %v3220_v12  ;;  %v4000_v12 = vld [vmem:[%s4463_s6 + $0x670] sm:$0xf0] }
 0x134   : > { %2405 = vmatpush.bf16.msrb.mxu3 %v3149_v57  ;;  %v3955_v57 = vld [vmem:[%s4463_s6 + $0x508] sm:$0xf0]  ;;  %2543 = vst [vmem:[%s4999_s13 + $0x50] sm:$0xff] %v2501_v18  ;;  %v3748_v15 = vld [vmem:[%s4463_s6 + $0x728] sm:$0xf]  ;;  %v2517_v18 = vld [vmem:[%s4455_s0 + $0xd0] sm:$0xff] }
 0x135   : > { %2367 = vmatpush.bf16.msrb.mxu0 %v2849_v62  ;;  %v3281_v62 = vor.u32 %v3907_v52, %v3280_v51  ;;  %v3473_v2 = vor.u32 %v3955_v57, %v3472_v56  ;;  %v3946_v51 = vld [vmem:[%s4463_s6 + $0x4c0] sm:$0xf0]  ;;  %v3532_v52 = vld [vmem:[%s4463_s6 + $0x578] sm:$0xf]  ;;  %v3545_v56 = vor.u32 %v3973_v31, %v3544_v29  ;;  %v3895_v57 = vld [vmem:[%s4463_s6 + $0x328] sm:$0xf0] }
 0x136   : > { %2380 = vmatpush.bf16.msrb.mxu1 %v2945_v63  ;;  %v3568_v63 = vld [vmem:[%s4463_s6 + $0x5c0] sm:$0xf]  ;;  %v3940_v29 = vld [vmem:[%s4463_s6 + $0x490] sm:$0xf0]  ;;  %v2502_v31 = vld [vmem:[%s4455_s0 + $0x58] sm:$0xff]  ;;  %2559 = vst [vmem:[%s4999_s13 + $0xd0] sm:$0xff] %v2517_v18 }
 0x137   : > { %2393 = vmatpush.bf16.msrb.mxu2 %v3041_v4  ;;  %v3364_v4 = vld [vmem:[%s4463_s6 + $0x428] sm:$0xf]  ;;  %2544 = vst [vmem:[%s4999_s13 + $0x58] sm:$0xff] %v2502_v31  ;;  %v3736_v31 = vld [vmem:[%s4463_s6 + $0x710] sm:$0xf] }
 0x138   : > { %2406 = vmatpush.bf16.msrb.mxu3 %v3137_v10  ;;  %v815_v10 = vperm.slane %v4964_v61, 0  ;;  %v2151_v11 = vpop.f32.mrf.mxu3 }
 0x139   : > { %2368 = vmatpush.bf16.msrb.mxu0 %v2837_v20  ;;  %v3365_v20 = vor.u32 %v3928_v5, %v3364_v4  ;;  %v4982_v24 = vpop.f32.mrf.mxu0  ;;  %v3943_v4 = vld [vmem:[%s4463_s6 + $0x4a8] sm:$0xf0]  ;;  %v3533_v11 = vor.u32 %v3970_v53, %v3532_v52  ;;  %v3676_v53 = vld [vmem:[%s4463_s6 + $0x698] sm:$0xf] }
 0x13a   : > { %2381 = vmatpush.bf16.msrb.mxu1 %v2933_v21  ;;  %v3461_v21 = vor.u32 %v3952_v8, %v3460_v6  ;;  %v4992_v36 = vpop.f32.mrf.mxu1  ;;  %v2111_v47 = vadd.f32 %v4921_v0, %v815_v10  ;;  %v3232_v0 = vld [vmem:[%s4463_s6 + $0x320] sm:$0xf]  ;;  %v3967_v10 = vld [vmem:[%s4463_s6 + $0x568] sm:$0xf0] }
 0x13b   : > { %2394 = vmatpush.bf16.msrb.mxu2 %v3029_v27  ;;  %v3448_v27 = vld [vmem:[%s4463_s6 + $0x4d0] sm:$0xf]  ;;  %v3520_v8 = vld [vmem:[%s4463_s6 + $0x560] sm:$0xf]  ;;  %v3233_v19 = vor.u32 %v3895_v57, %v3232_v0  ;;  %v3772_v0 = vld [vmem:[%s4463_s6 + $0x758] sm:$0xf] }
 0x13c   : > { %2407 = vmatpush.bf16.msrb.mxu3 %v3125_v37  ;;  %2369 = vmatmul.bf16.vlgmr.msrb.gmra.mxu0 %v4592_v38  ;;  %v3979_v38 = vld [vmem:[%s4463_s6 + $0x5c8] sm:$0xf0]  ;;  %v3244_v37 = vld [vmem:[%s4463_s6 + $0x338] sm:$0xf]  ;;  %v2499_v6 = vld [vmem:[%s4455_s0 + $0x40] sm:$0xff] }
 0x13d   : > { %2413 = vmatpush.bf16.msra.mxu0 %v3305_v28  ;;  %2382 = vmatmul.bf16.vlgmr.msrb.gmra.mxu1 %v4608_v54  ;;  %v3569_v54 = vor.u32 %v3979_v38, %v3568_v63  ;;  %v3949_v28 = vld [vmem:[%s4463_s6 + $0x4d8] sm:$0xf0]  ;;  %v3245_v60 = vor.u32 %v3898_v40, %v3244_v37  ;;  %v3919_v63 = vld [vmem:[%s4463_s6 + $0x3e8] sm:$0xf0]  ;;  %2541 = vst [vmem:[%s4999_s13 + $0x40] sm:$0xff] %v2499_v6 }
 0x13e   : > { %2426 = vmatpush.bf16.msra.mxu1 %v3401_v32  ;;  %2395 = vmatmul.bf16.vlgmr.msrb.gmra.mxu2 %v4585_v30  ;;  %v3268_v30 = vld [vmem:[%s4463_s6 + $0x368] sm:$0xf]  ;;  %v2491_v32 = vld [vmem:[%s4455_s0] sm:$0xff]  ;;  %v4033_v37 = vld [vmem:[%s4463_s6 + $0x778] sm:$0xf0] }
 0x13f   : > { %2439 = vmatpush.bf16.msra.mxu2 %v3497_v33  ;;  %2408 = vmatmul.bf16.vlgmr.msrb.gmra.mxu3 %v4594_v39  ;;  %v3269_v16 = vor.u32 %v3904_v3, %v3268_v30  ;;  %v3352_v39 = vld [vmem:[%s4463_s6 + $0x410] sm:$0xf]  ;;  %v2492_v33 = vld [vmem:[%s4455_s0 + $0x8] sm:$0xff]  ;;  %2533 = vst [vmem:[%s4999_s13] sm:$0xff] %v2491_v32  ;;  %v2498_v38 = vld [vmem:[%s4455_s0 + $0x38] sm:$0xff] }
 0x140   : > { %2452 = vmatpush.bf16.msra.mxu3 %v3593_v43  ;;  %v3340_v43 = vld [vmem:[%s4463_s6 + $0x3f8] sm:$0xf]  ;;  %2534 = vst [vmem:[%s4999_s13 + $0x8] sm:$0xff] %v2492_v33  ;;  %v3353_v48 = vor.u32 %v3925_v25, %v3352_v39  ;;  %v3424_v3 = vld [vmem:[%s4463_s6 + $0x4a0] sm:$0xf] }
 0x141   : > { %2414 = vmatpush.bf16.msra.mxu0 %v3293_v46  ;;  %v2495_v46 = vld [vmem:[%s4455_s0 + $0x20] sm:$0xff]  ;;  %v5018_v59 = vpop.f32.mrf.mxu2  ;;  %v2164_v5 = vpop.f32.mrf.mxu0  ;;  %2540 = vst [vmem:[%s4999_s13 + $0x38] sm:$0xff] %v2498_v38  ;;  %v3316_v39 = vld [vmem:[%s4463_s6 + $0x3c8] sm:$0xf]  ;;  %v4009_v33 = vld [vmem:[%s4463_s6 + $0x6b8] sm:$0xf0] }
 0x142   : > { %2427 = vmatpush.bf16.msra.mxu1 %v3389_v49  ;;  %v3449_v49 = vor.u32 %v3949_v28, %v3448_v27  ;;  %2537 = vst [vmem:[%s4999_s13 + $0x20] sm:$0xff] %v2495_v46  ;;  %v3425_v27 = vor.u32 %v3943_v4, %v3424_v3  ;;  %v3412_v28 = vld [vmem:[%s4463_s6 + $0x488] sm:$0xf]  ;;  %v3688_v32 = vld [vmem:[%s4463_s6 + $0x6b0] sm:$0xf] }
 0x143   : > { %2440 = vmatpush.bf16.msra.mxu2 %v3485_v50  ;;  %v3436_v50 = vld [vmem:[%s4463_s6 + $0x4b8] sm:$0xf]  ;;  %v4030_v57 = vld [vmem:[%s4463_s6 + $0x760] sm:$0xf0]  ;;  %v3664_v38 = vld [vmem:[%s4463_s6 + $0x680] sm:$0xf] }
 0x144   : > { %2453 = vmatpush.bf16.msra.mxu3 %v3581_v58  ;;  %v2497_v58 = vld [vmem:[%s4455_s0 + $0x30] sm:$0xff]  ;;  %v3437_v30 = vor.u32 %v3946_v51, %v3436_v50  ;;  %v2504_v40 = vld [vmem:[%s4455_s0 + $0x68] sm:$0xff]  ;;  %v2506_v50 = vld [vmem:[%s4455_s0 + $0x78] sm:$0xff]  ;;  %v3689_v51 = vor.u32 %v4009_v33, %v3688_v32  ;;  %v3773_v3 = vor.u32 %v4030_v57, %v3772_v0 }
 0x145   : > { %2415 = vmatpush.bf16.msra.mxu0 %v3281_v62  ;;  %v3328_v62 = vld [vmem:[%s4463_s6 + $0x3e0] sm:$0xf]  ;;  %2539 = vst [vmem:[%s4999_s13 + $0x30] sm:$0xff] %v2497_v58  ;;  %v2508_v58 = vld [vmem:[%s4455_s0 + $0x88] sm:$0xff] }
 0x146   : > { %2428 = vmatpush.bf16.msra.mxu1 %v3377_v1  ;;  %v2124_v1 = vadd.f32 %v4935_v22, %v2111_v47  ;;  %v5032_v22 = vpop.f32.mrf.mxu3  ;;  %v3329_v25 = vor.u32 %v3919_v63, %v3328_v62  ;;  %2546 = vst [vmem:[%s4999_s13 + $0x68] sm:$0xff] %v2504_v40  ;;  %v2509_v62 = vld [vmem:[%s4455_s0 + $0x90] sm:$0x3]  ;;  %v2511_v5 = vld [vmem:[%s4455_s0 + $0xa0] sm:$0x3]  ;;  %v2512_v6 = vld [vmem:[%s4455_s0 + $0xa8] sm:$0xff] }
 0x147   : > { %2441 = vmatpush.bf16.msra.mxu2 %v3473_v2  ;;  %v3341_v2 = vor.u32 %v3922_v45, %v3340_v43  ;;  %v3964_v43 = vld [vmem:[%s4463_s6 + $0x550] sm:$0xf0]  ;;  %2548 = vst [vmem:[%s4999_s13 + $0x78] sm:$0xff] %v2506_v50  ;;  %v3760_v4 = vld [vmem:[%s4463_s6 + $0x740] sm:$0xf]  ;;  %v2528_v0 = vld [vmem:[%s4455_s0 + $0x128] sm:$0xff] }
 0x148   : > { %2454 = vmatpush.bf16.msra.mxu3 %v3569_v54  ;;  %v2500_v54 = vld [vmem:[%s4455_s0 + $0x48] sm:$0xff]  ;;  %v2505_v45 = vld [vmem:[%s4455_s0 + $0x70] sm:$0xff]  ;;  %2550 = vst [vmem:[%s4999_s13 + $0x88] sm:$0xff] %v2508_v58 }
 0x149   : > { %2416 = vmatpush.bf16.msra.mxu0 %v3269_v16  ;;  %v2177_v16 = vpop.f32.mrf.mxu1  ;;  %2542 = vst [vmem:[%s4999_s13 + $0x48] sm:$0xff] %v2500_v54  ;;  %v2190_v46 = vpop.f32.mrf.mxu2  ;;  %v4021_v32 = vld [vmem:[%s4463_s6 + $0x718] sm:$0xf0]  ;;  %v2521_v33 = vld [vmem:[%s4455_s0 + $0xf0] sm:$0xff]  ;;  %v4015_v58 = vld [vmem:[%s4463_s6 + $0x6e8] sm:$0xf0] }
 0x14a   : > { %2429 = vmatpush.bf16.msra.mxu1 %v3365_v20  ;;  %v3916_v20 = vld [vmem:[%s4463_s6 + $0x3d0] sm:$0xf0]  ;;  %2547 = vst [vmem:[%s4999_s13 + $0x70] sm:$0xff] %v2505_v45  ;;  %v2516_v16 = vld [vmem:[%s4455_s0 + $0xc8] sm:$0xff]  ;;  %v3737_v40 = vor.u32 %v4021_v32, %v3736_v31  ;;  %v4018_v46 = vld [vmem:[%s4463_s6 + $0x700] sm:$0xf0] }
 0x14b   : > { %2442 = vmatpush.bf16.msra.mxu2 %v3461_v21  ;;  %v2137_v21 = vadd.f32 %v4939_v26, %v2124_v1  ;;  %v3521_v26 = vor.u32 %v3967_v10, %v3520_v8  ;;  %v4003_v1 = vld [vmem:[%s4463_s6 + $0x688] sm:$0xf0]  ;;  %2551 = vst [vmem:[%s4999_s13 + $0x90] sm:$0x3] %v2509_v62  ;;  %v2513_v8 = vld [vmem:[%s4455_s0 + $0xb0] sm:$0xff] }
 0x14c   : > { %2455 = vmatpush.bf16.msra.mxu3 %v3557_v35  ;;  %v3784_v35 = vld [vmem:[%s4463_s6 + $0x770] sm:$0xf]  ;;  %2553 = vst [vmem:[%s4999_s13 + $0xa0] sm:$0x3] %v2511_v5  ;;  %v3665_v54 = vor.u32 %v4003_v1, %v3664_v38  ;;  %v3724_v45 = vld [vmem:[%s4463_s6 + $0x6f8] sm:$0xf] }
 0x14d   : > { %2417 = vmatpush.bf16.msra.mxu0 %v3257_v42  ;;  %v3508_v42 = vld [vmem:[%s4463_s6 + $0x548] sm:$0xf]  ;;  %v2150_v47 = vadd.f32 %v4950_v44, %v2137_v21  ;;  %v3785_v52 = vor.u32 %v4033_v37, %v3784_v35  ;;  %2554 = vst [vmem:[%s4999_s13 + $0xa8] sm:$0xff] %v2512_v6  ;;  %v2523_v35 = vld [vmem:[%s4455_s0 + $0x100] sm:$0xff]  ;;  %v2529_v62 = vld [vmem:[%s4455_s0 + $0x130] sm:$0xff] }
 0x14e   : > { %2430 = vmatpush.bf16.msra.mxu1 %v3353_v48  ;;  %v3317_v48 = vor.u32 %v3916_v20, %v3316_v39  ;;  %v3509_v44 = vor.u32 %v3964_v43, %v3508_v42  ;;  %2555 = vst [vmem:[%s4999_s13 + $0xb0] sm:$0xff] %v2513_v8  ;;  %v2518_v39 = vld [vmem:[%s4455_s0 + $0xd8] sm:$0xff]  ;;  %v3994_v42 = vld [vmem:[%s4463_s6 + $0x640] sm:$0xf0]  ;;  %v3712_v57 = vld [vmem:[%s4463_s6 + $0x6e0] sm:$0xf] }
 0x14f   : > { %2443 = vmatpush.bf16.msra.mxu2 %v3449_v49  ;;  %v3413_v49 = vor.u32 %v3940_v29, %v3412_v28  ;;  %v2163_v63 = vadd.f32 %v4982_v24, %v2150_v47  ;;  %v4027_v24 = vld [vmem:[%s4463_s6 + $0x748] sm:$0xf0]  ;;  %2558 = vst [vmem:[%s4999_s13 + $0xc8] sm:$0xff] %v2516_v16  ;;  %v3997_v28 = vld [vmem:[%s4463_s6 + $0x658] sm:$0xf0]  ;;  %v2525_v47 = vld [vmem:[%s4455_s0 + $0x110] sm:$0xff] }
 0x150   : > { %2456 = vmatpush.bf16.msra.mxu3 %v3545_v56  ;;  %v2507_v56 = vld [vmem:[%s4455_s0 + $0x80] sm:$0xff]  ;;  %2560 = vst [vmem:[%s4999_s13 + $0xd8] sm:$0xff] %v2518_v39  ;;  %v3700_v6 = vld [vmem:[%s4463_s6 + $0x6c8] sm:$0xf] }
 0x151   : > { %2418 = vmatpush.bf16.msra.mxu0 %v3245_v60  ;;  %v2203_v60 = vpop.f32.mrf.mxu3  ;;  %2549 = vst [vmem:[%s4999_s13 + $0x80] sm:$0xff] %v2507_v56  ;;  %v2176_v10 = vadd.f32 %v4992_v36, %v2163_v63  ;;  %v4024_v36 = vld [vmem:[%s4463_s6 + $0x730] sm:$0xf0]  ;;  %v2530_v63 = vld [vmem:[%s4455_s0 + $0x138] sm:$0x3] }
 0x152   : > { %2431 = vmatpush.bf16.msra.mxu1 %v3341_v2  ;;  %v2510_v2 = vld [vmem:[%s4455_s0 + $0x98] sm:$0x3]  ;;  %v3749_v21 = vor.u32 %v4024_v36, %v3748_v15  ;;  %2563 = vst [vmem:[%s4999_s13 + $0xf0] sm:$0xff] %v2521_v33  ;;  %v2531_v1 = vld [vmem:[%s4455_s0 + $0x140] sm:$0x3]  ;;  %v816_v15 = vperm.slane %v4964_v61, 1 }
 0x153   : > { %2444 = vmatpush.bf16.msra.mxu2 %v3437_v30  ;;  %v3677_v30 = vor.u32 %v4006_v55, %v3676_v53  ;;  %2552 = vst [vmem:[%s4999_s13 + $0x98] sm:$0x3] %v2510_v2  ;;  %v3991_v53 = vld [vmem:[%s4463_s6 + $0x628] sm:$0xf0]  ;;  %v2532_v2 = vld [vmem:[%s4455_s0 + $0x148] sm:$0x3] }
 0x154   : > { %2457 = vmatpush.bf16.msra.mxu3 %v3533_v11  ;;  %v3652_v11 = vld [vmem:[%s4463_s6 + $0x668] sm:$0xf]  ;;  %2565 = vst [vmem:[%s4999_s13 + $0x100] sm:$0xff] %v2523_v35  ;;  %v3988_v5 = vld [vmem:[%s4463_s6 + $0x610] sm:$0xf0] }
 0x155   : > { %2419 = vmatpush.bf16.msra.mxu0 %v3233_v19  ;;  %v2189_v19 = vadd.f32 %v5018_v59, %v2176_v10  ;;  %v3653_v20 = vor.u32 %v4000_v12, %v3652_v11  ;;  %v2520_v59 = vld [vmem:[%s4455_s0 + $0xe8] sm:$0xff]  ;;  %2567 = vst [vmem:[%s4999_s13 + $0x110] sm:$0xff] %v2525_v47  ;;  %v4012_v8 = vld [vmem:[%s4463_s6 + $0x6d0] sm:$0xf0] }
 0x156   : > { %2432 = vmatpush.bf16.msra.mxu1 %v3329_v25  ;;  %v2519_v25 = vld [vmem:[%s4455_s0 + $0xe0] sm:$0xff]  ;;  %2562 = vst [vmem:[%s4999_s13 + $0xe8] sm:$0xff] %v2520_v59 }
 0x157   : > { %2445 = vmatpush.bf16.msra.mxu2 %v3425_v27  ;;  %v3640_v27 = vld [vmem:[%s4463_s6 + $0x650] sm:$0xf]  ;;  %v2202_v34 = vadd.f32 %v5032_v22, %v2189_v19  ;;  %2561 = vst [vmem:[%s4999_s13 + $0xe0] sm:$0xff] %v2519_v25  ;;  %v2524_v22 = vld [vmem:[%s4455_s0 + $0x108] sm:$0xff] }
 0x158   : > { %2458 = vmatpush.bf16.msra.mxu3 %v3521_v26  ;;  %v2522_v26 = vld [vmem:[%s4455_s0 + $0xf8] sm:$0xff]  ;;  %v3641_v37 = vor.u32 %v3997_v28, %v3640_v27  ;;  %2566 = vst [vmem:[%s4999_s13 + $0x108] sm:$0xff] %v2524_v22 }
 0x159   : > { %2420 = vmatpush.bf16.msra.mxu0 %v3221_v41  ;;  %v3628_v41 = vld [vmem:[%s4463_s6 + $0x638] sm:$0xf]  ;;  %2564 = vst [vmem:[%s4999_s13 + $0xf8] sm:$0xff] %v2522_v26 }
 0x15a   : > { %2433 = vmatpush.bf16.msra.mxu1 %v3317_v48  ;;  %v2227_v29 = vpop.f32.mrf.mxu1  ;;  %v2526_v48 = vld [vmem:[%s4455_s0 + $0x118] sm:$0xff]  ;;  %v3629_v50 = vor.u32 %v3994_v42, %v3628_v41  ;;  %2570 = vst [vmem:[%s4999_s13 + $0x128] sm:$0xff] %v2528_v0 }
 0x15b   : > { %2446 = vmatpush.bf16.msra.mxu2 %v3413_v49  ;;  %v2527_v49 = vld [vmem:[%s4455_s0 + $0x120] sm:$0xff]  ;;  %2568 = vst [vmem:[%s4999_s13 + $0x118] sm:$0xff] %v2526_v48 }
 0x15c   : > { %2459 = vmatpush.bf16.msra.mxu3 %v3509_v44  ;;  %2421 = vmatmul.bf16.vlgmr.msra.gmra.mxu0 %v4659_v9  ;;  %v2514_v9 = vld [vmem:[%s4455_s0 + $0xb8] sm:$0xff]  ;;  %2569 = vst [vmem:[%s4999_s13 + $0x120] sm:$0xff] %v2527_v49 }
 0x15d   : > { %2465 = vmatpush.bf16.msrb.mxu0 %v3689_v51  ;;  %2434 = vmatmul.bf16.vlgmr.msra.gmra.mxu1 %v4665_v17  ;;  %v2515_v17 = vld [vmem:[%s4455_s0 + $0xc0] sm:$0xff]  ;;  %2556 = vst [vmem:[%s4999_s13 + $0xb8] sm:$0xff] %v2514_v9  ;;  %v3725_v51 = vor.u32 %v4018_v46, %v3724_v45 }
 0x15e   : > { %2478 = vmatpush.bf16.msrb.mxu1 %v3785_v52  ;;  %2447 = vmatmul.bf16.vlgmr.msra.gmra.mxu2 %v4661_v13  ;;  %v3761_v13 = vor.u32 %v4027_v24, %v3760_v4  ;;  %2557 = vst [vmem:[%s4999_s13 + $0xc0] sm:$0xff] %v2515_v17  ;;  %v3616_v52 = vld [vmem:[%s4463_s6 + $0x620] sm:$0xf]  ;;  %v3604_v4 = vld [vmem:[%s4463_s6 + $0x608] sm:$0xf] }
 0x15f   : > { %2460 = vmatmul.bf16.vlgmr.msra.gmra.mxu3 %v4671_v23  ;;  %v2214_v23 = vpop.f32.mrf.mxu0  ;;  %2571 = vst [vmem:[%s4999_s13 + $0x130] sm:$0xff] %v2529_v62  ;;  %v3605_v9 = vor.u32 %v3988_v5, %v3604_v4 }
 0x160   : > { %v2215_v43 = vadd.f32 %v2214_v23, %v2202_v34  ;;  %2572 = vst [vmem:[%s4999_s13 + $0x138] sm:$0x3] %v2530_v63 }
 0x161   : > { %2466 = vmatpush.bf16.msrb.mxu0 %v3677_v30  ;;  %v2240_v56 = vpop.f32.mrf.mxu2  ;;  %v3617_v30 = vor.u32 %v3991_v53, %v3616_v52  ;;  %2573 = vst [vmem:[%s4999_s13 + $0x140] sm:$0x3] %v2531_v1  ;;  %v817_v52 = vperm.slane %v4964_v61, 2 }
 0x162   : > { %2479 = vmatpush.bf16.msrb.mxu1 %v3773_v3  ;;  %v2228_v44 = vadd.f32 %v2227_v29, %v2215_v43  ;;  %v2229_v60 = vpop.f32.mrf.mxu1  ;;  %v2253_v38 = vpop.f32.mrf.mxu3  ;;  %v3713_v3 = vor.u32 %v4015_v58, %v3712_v57  ;;  %2574 = vst [vmem:[%s4999_s13 + $0x148] sm:$0x3] %v2532_v2  ;;  %v2241_v16 = vadd.f32 %v2240_v56, %v816_v15  ;;  %v2627_v15 = vld [vmem:[%s4999_s13 + $0x20] sm:$0xff] (%p4298_p10) }
 0x163   : > { %2628 = vst [vmem:[%s5169_s15 + $0x38] sm:$0xff] (%p4298_p10), %v2627_v15 }
 0x164   : > { %v2578_v24 = vrot.slane %v2228_v44, 6  ;;  %v2587_v10 = vrot.slane %v2228_v44, 2  ;;  %v2254_v23 = vadd.f32 %v2253_v38, %v2241_v16  ;;  %v2631_v16 = vld [vmem:[%s4999_s13 + $0x30] sm:$0xff] (%p4298_p10) }
 0x165   : > { %2467 = vmatpush.bf16.msrb.mxu0 %v3665_v54  ;;  %v3701_v54 = vor.u32 %v4012_v8, %v3700_v6  ;;  %2632 = vst [vmem:[%s5169_s15 + $0x60] sm:$0xff] (%p4298_p10), %v2631_v16 }
 0x166   : > { %2480 = vmatpush.bf16.msrb.mxu1 %v3761_v13  ;;  %2584 = vst [vmem:[%s4999_s13 + $0x90] sm:$0x3c] %v2578_v24 }
 0x167   : > { %v2216_v55 = vpop.f32.mrf.mxu0  ;;  %3786 = vst [vmem:[%s4999_s13 + $0x138] sm:$0x3c] %v2587_v10 }
 0x169   : > { %2468 = vmatpush.bf16.msrb.mxu0 %v3653_v20  ;;  %v2242_v13 = vpop.f32.mrf.mxu2 }
 0x16a   : > { %2481 = vmatpush.bf16.msrb.mxu1 %v3749_v21  ;;  %v2255_v11 = vpop.f32.mrf.mxu3  ;;  %v2619_v13 = vld [vmem:[%s4999_s13] sm:$0xff] (%p4298_p10) }
 0x16b   : > { %v2621_v11 = vld [vmem:[%s4999_s13 + $0x8] sm:$0xff] (%p4298_p10)  ;;  %2620 = vst [vmem:[%s5169_s15] sm:$0xff] (%p4298_p10), %v2619_v13 }
 0x16c   : > { %2622 = vst [vmem:[%s5169_s15 + $0x8] sm:$0xff] (%p4298_p10), %v2621_v11 }
 0x16d   : > { %2469 = vmatpush.bf16.msrb.mxu0 %v3641_v37 }
 0x16e   : > { %2482 = vmatpush.bf16.msrb.mxu1 %v3737_v40 }
 0x171   : > { %2470 = vmatpush.bf16.msrb.mxu0 %v3629_v50 }
 0x172   : > { %2483 = vmatpush.bf16.msrb.mxu1 %v3725_v51 }
 0x175   : > { %2471 = vmatpush.bf16.msrb.mxu0 %v3617_v30 }
 0x176   : > { %2484 = vmatpush.bf16.msrb.mxu1 %v3713_v3 }
 0x179   : > { %2472 = vmatpush.bf16.msrb.mxu0 %v3605_v9  ;;  %v2266_v12 = vpop.f32.mrf.mxu0 }
 0x17a   : > { %2485 = vmatpush.bf16.msrb.mxu1 %v3701_v54  ;;  %v2279_v17 = vpop.f32.mrf.mxu1  ;;  %v2267_v21 = vadd.f32 %v2266_v12, %v2254_v23  ;;  %v2623_v12 = vld [vmem:[%s4999_s13 + $0x10] sm:$0xff] (%p4298_p10) }
 0x17b   : > { %2624 = vst [vmem:[%s5169_s15 + $0x10] sm:$0xff] (%p4298_p10), %v2623_v12  ;;  %v2639_v23 = vld [vmem:[%s4999_s13 + $0x50] sm:$0xff] (%p4298_p10) }
 0x17c   : > { %2473 = vmatmul.bf16.vlgmr.msrb.gmra.mxu0 %v4730_v7  ;;  %v2280_v27 = vadd.f32 %v2279_v17, %v2267_v21  ;;  %v2625_v17 = vld [vmem:[%s4999_s13 + $0x18] sm:$0xff] (%p4298_p10)  ;;  %v2643_v21 = vld [vmem:[%s4999_s13 + $0x60] sm:$0xff] (%p4298_p10)  ;;  %2640 = vst [vmem:[%s5169_s15 + $0x98] sm:$0xff] (%p4298_p10), %v2639_v23 }
 0x17d   : > { %2486 = vmatmul.bf16.vlgmr.msrb.gmra.mxu1 %v4735_v14  ;;  %2626 = vst [vmem:[%s5169_s15 + $0x30] sm:$0xff] (%p4298_p10), %v2625_v17 }
 0x17e   : > { %2644 = vst [vmem:[%s5169_s15 + $0xc0] sm:$0xff] (%p4298_p10), %v2643_v21 }
 0x181   : > { %v2292_v36 = vpop.f32.mrf.mxu2  ;;  %v2268_v18 = vpop.f32.mrf.mxu0 }
 0x182   : > { %v2305_v19 = vpop.f32.mrf.mxu3  ;;  %v2281_v39 = vpop.f32.mrf.mxu1  ;;  %v2293_v28 = vadd.f32 %v2292_v36, %v2280_v27  ;;  %v2629_v36 = vld [vmem:[%s4999_s13 + $0x28] sm:$0xff] (%p4298_p10)  ;;  %v2633_v18 = vld [vmem:[%s4999_s13 + $0x38] sm:$0xff] (%p4298_p10)  ;;  %v2647_v27 = vld [vmem:[%s4999_s13 + $0x70] sm:$0xff] (%p4298_p10) }
 0x183   : > { %2630 = vst [vmem:[%s5169_s15 + $0x40] sm:$0xff] (%p4298_p10), %v2629_v36  ;;  %v2637_v39 = vld [vmem:[%s4999_s13 + $0x48] sm:$0xff] (%p4298_p10) }
 0x184   : > { %v2306_v7 = vadd.f32 %v2305_v19, %v2293_v28  ;;  %v2635_v19 = vld [vmem:[%s4999_s13 + $0x40] sm:$0xff] (%p4298_p10)  ;;  %2634 = vst [vmem:[%s5169_s15 + $0x68] sm:$0xff] (%p4298_p10), %v2633_v18  ;;  %v2649_v28 = vld [vmem:[%s4999_s13 + $0x78] sm:$0xff] (%p4298_p10) }
 0x185   : > { %2636 = vst [vmem:[%s5169_s15 + $0x70] sm:$0xff] (%p4298_p10), %v2635_v19 }
 0x186   : > { %2638 = vst [vmem:[%s5169_s15 + $0x90] sm:$0xff] (%p4298_p10), %v2637_v39 }
 0x187   : > { %2648 = vst [vmem:[%s5169_s15 + $0xd0] sm:$0xff] (%p4298_p10), %v2647_v27 }
 0x188   : > { %2650 = vst [vmem:[%s5169_s15 + $0xf0] sm:$0xff] (%p4298_p10), %v2649_v28 }
 0x189   : > { %v2294_v20 = vpop.f32.mrf.mxu2 }
 0x18a   : > { %v2307_v25 = vpop.f32.mrf.mxu3  ;;  %v2641_v20 = vld [vmem:[%s4999_s13 + $0x58] sm:$0xff] (%p4298_p10) }
 0x18b   : > { %v2645_v25 = vld [vmem:[%s4999_s13 + $0x68] sm:$0xff] (%p4298_p10)  ;;  %2642 = vst [vmem:[%s5169_s15 + $0xa0] sm:$0xff] (%p4298_p10), %v2641_v20 }
 0x18c   : > { %2646 = vst [vmem:[%s5169_s15 + $0xc8] sm:$0xff] (%p4298_p10), %v2645_v25 }
 0x199   : > { %v2318_v29 = vpop.f32.mrf.mxu0 }
 0x19a   : > { %v2331_v14 = vpop.f32.mrf.mxu1  ;;  %v2319_v59 = vadd.f32 %v2318_v29, %v2306_v7  ;;  %v2651_v7 = vld [vmem:[%s4999_s13 + $0x80] sm:$0xff] (%p4298_p10)  ;;  %v2653_v29 = vld [vmem:[%s4999_s13 + $0x88] sm:$0xff] (%p4298_p10) }
 0x19b   : > { %2652 = vst [vmem:[%s5169_s15 + $0xf8] sm:$0xff] (%p4298_p10), %v2651_v7 }
 0x19c   : > { %v2332_v31 = vadd.f32 %v2331_v14, %v2319_v59  ;;  %v2655_v14 = vld [vmem:[%s4999_s13 + $0x90] sm:$0xff] (%p4298_p10)  ;;  %2654 = vst [vmem:[%s5169_s15 + $0x100] sm:$0xff] (%p4298_p10), %v2653_v29 }
 0x19d   : > { %2656 = vst [vmem:[%s5169_s15 + $0x120] sm:$0xff] (%p4298_p10), %v2655_v14 }
 0x1a1   : > { %v2344_v32 = vpop.f32.mrf.mxu2  ;;  %v2320_v26 = vpop.f32.mrf.mxu0 }
 0x1a2   : > { %v2345_v33 = vadd.f32 %v2344_v32, %v2332_v31  ;;  %v2357_v34 = vpop.f32.mrf.mxu3  ;;  %v2333_v37 = vpop.f32.mrf.mxu1  ;;  %v2661_v32 = vld [vmem:[%s4999_s13 + $0xa8] sm:$0xff] (%p4298_p10)  ;;  %v2667_v26 = vld [vmem:[%s4999_s13 + $0xc0] sm:$0xff] (%p4298_p10) }
 0x1a3   : > { %2662 = vst [vmem:[%s5169_s15 + $0x150] sm:$0xff] (%p4298_p10), %v2661_v32  ;;  %v2671_v37 = vld [vmem:[%s4999_s13 + $0xd0] sm:$0xff] (%p4298_p10) }
 0x1a4   : > { %v2358_v35 = vadd.f32 %v2357_v34, %v2345_v33  ;;  %v2663_v33 = vld [vmem:[%s4999_s13 + $0xb0] sm:$0xff] (%p4298_p10)  ;;  %v2665_v34 = vld [vmem:[%s4999_s13 + $0xb8] sm:$0xff] (%p4298_p10)  ;;  %2668 = vst [vmem:[%s5169_s15 + $0x180] sm:$0xff] (%p4298_p10), %v2667_v26 }
 0x1a5   : > { %2664 = vst [vmem:[%s5169_s15 + $0x158] sm:$0xff] (%p4298_p10), %v2663_v33 }
 0x1a6   : > { %v2579_v40 = vrot.slane %v2358_v35, 6  ;;  %v2588_v41 = vrot.slane %v2358_v35, 2  ;;  %v2669_v35 = vld [vmem:[%s4999_s13 + $0xc8] sm:$0xff] (%p4298_p10)  ;;  %2666 = vst [vmem:[%s5169_s15 + $0x160] sm:$0xff] (%p4298_p10), %v2665_v34 }
 0x1a7   : > { %2670 = vst [vmem:[%s5169_s15 + $0x188] sm:$0xff] (%p4298_p10), %v2669_v35 }
 0x1a8   : > { %2585 = vst [vmem:[%s4999_s13 + $0x98] sm:$0x3c] %v2579_v40  ;;  %v2673_v40 = vld [vmem:[%s4999_s13 + $0xd8] sm:$0xff] (%p4298_p10) }
 0x1a9   : > { %v2346_v42 = vpop.f32.mrf.mxu2  ;;  %3787 = vst [vmem:[%s4999_s13 + $0x140] sm:$0x3c] %v2588_v41  ;;  %v2675_v41 = vld [vmem:[%s4999_s13 + $0xe0] sm:$0xff] (%p4298_p10) }
 0x1aa   : > { %v2359_v43 = vpop.f32.mrf.mxu3  ;;  %2672 = vst [vmem:[%s5169_s15 + $0x190] sm:$0xff] (%p4298_p10), %v2671_v37  ;;  %v2677_v42 = vld [vmem:[%s4999_s13 + $0xe8] sm:$0xff] (%p4298_p10) }
 0x1ab   : > { %2674 = vst [vmem:[%s5169_s15 + $0x1b0] sm:$0xff] (%p4298_p10), %v2673_v40  ;;  %v2679_v43 = vld [vmem:[%s4999_s13 + $0xf0] sm:$0xff] (%p4298_p10) }
 0x1ac   : > { %2676 = vst [vmem:[%s5169_s15 + $0x1b8] sm:$0xff] (%p4298_p10), %v2675_v41 }
 0x1ad   : > { %2678 = vst [vmem:[%s5169_s15 + $0x1c0] sm:$0xff] (%p4298_p10), %v2677_v42 }
 0x1ae   : > { %2680 = vst [vmem:[%s5169_s15 + $0x1e0] sm:$0xff] (%p4298_p10), %v2679_v43 }
 0x1af   : > { %v2657_v59 = vld [vmem:[%s4999_s13 + $0x98] sm:$0xff] (%p4298_p10) }
 0x1b0   : > { %2658 = vst [vmem:[%s5169_s15 + $0x128] sm:$0xff] (%p4298_p10), %v2657_v59 }
 0x1b9   : > { %v2370_v22 = vpop.f32.mrf.mxu0 }
 0x1ba   : > { %v2383_v45 = vpop.f32.mrf.mxu1  ;;  %v2371_v55 = vadd.f32 %v2370_v22, %v817_v52  ;;  %v2681_v22 = vld [vmem:[%s4999_s13 + $0xf8] sm:$0xff] (%p4298_p10) }
 0x1bb   : > { %2682 = vst [vmem:[%s5169_s15 + $0x1e8] sm:$0xff] (%p4298_p10), %v2681_v22  ;;  %v2697_v52 = vld [vmem:[%s4999_s13 + $0x138] sm:$0xff] (%p4298_p10) }
 0x1bc   : > { %v2384_v44 = vadd.f32 %v2383_v45, %v2371_v55  ;;  %v2683_v45 = vld [vmem:[%s4999_s13 + $0x100] sm:$0xff] (%p4298_p10)  ;;  %2698 = vst [vmem:[%s5169_s15 + $0x270] sm:$0xff] (%p4298_p10), %v2697_v52 }
 0x1bd   : > { %2684 = vst [vmem:[%s5169_s15 + $0x1f0] sm:$0xff] (%p4298_p10), %v2683_v45 }
 0x1c1   : > { %v2396_v46 = vpop.f32.mrf.mxu2  ;;  %v2372_v47 = vpop.f32.mrf.mxu0 }
 0x1c2   : > { %v2409_v48 = vpop.f32.mrf.mxu3  ;;  %v2385_v49 = vpop.f32.mrf.mxu1  ;;  %v2397_v58 = vadd.f32 %v2396_v46, %v2384_v44  ;;  %v2685_v46 = vld [vmem:[%s4999_s13 + $0x108] sm:$0xff] (%p4298_p10)  ;;  %v2687_v47 = vld [vmem:[%s4999_s13 + $0x110] sm:$0xff] (%p4298_p10) }
 0x1c3   : > { %2686 = vst [vmem:[%s5169_s15 + $0x210] sm:$0xff] (%p4298_p10), %v2685_v46  ;;  %v2691_v49 = vld [vmem:[%s4999_s13 + $0x120] sm:$0xff] (%p4298_p10) }
 0x1c4   : > { %v2410_v63 = vadd.f32 %v2409_v48, %v2397_v58  ;;  %v2689_v48 = vld [vmem:[%s4999_s13 + $0x118] sm:$0xff] (%p4298_p10)  ;;  %2688 = vst [vmem:[%s5169_s15 + $0x218] sm:$0xff] (%p4298_p10), %v2687_v47 }
 0x1c5   : > { %2690 = vst [vmem:[%s5169_s15 + $0x220] sm:$0xff] (%p4298_p10), %v2689_v48 }
 0x1c6   : > { %2692 = vst [vmem:[%s5169_s15 + $0x240] sm:$0xff] (%p4298_p10), %v2691_v49 }
 0x1c9   : > { %v2398_v50 = vpop.f32.mrf.mxu2 }
 0x1ca   : > { %v2411_v51 = vpop.f32.mrf.mxu3  ;;  %v2693_v50 = vld [vmem:[%s4999_s13 + $0x128] sm:$0xff] (%p4298_p10) }
 0x1cb   : > { %v2695_v51 = vld [vmem:[%s4999_s13 + $0x130] sm:$0xff] (%p4298_p10)  ;;  %2694 = vst [vmem:[%s5169_s15 + $0x248] sm:$0xff] (%p4298_p10), %v2693_v50 }
 0x1cc   : > { %2696 = vst [vmem:[%s5169_s15 + $0x250] sm:$0xff] (%p4298_p10), %v2695_v51 }
 0x1d9   : > { %v2422_v53 = vpop.f32.mrf.mxu0 }
 0x1da   : > { %v2435_v56 = vpop.f32.mrf.mxu1  ;;  %v2423_v1 = vadd.f32 %v2422_v53, %v2410_v63  ;;  %v2699_v53 = vld [vmem:[%s4999_s13 + $0x140] sm:$0xff] (%p4298_p10) }
 0x1db   : > { %2700 = vst [vmem:[%s5169_s15 + $0x278] sm:$0xff] (%p4298_p10), %v2699_v53 }
 0x1dc   : > { %v2436_v30 = vadd.f32 %v2435_v56, %v2423_v1 }
 0x1e1   : > { %v2448_v0 = vpop.f32.mrf.mxu2  ;;  %v2424_v57 = vpop.f32.mrf.mxu0 }
 0x1e2   : > { %v2437_v60 = vpop.f32.mrf.mxu1  ;;  %v2461_v62 = vpop.f32.mrf.mxu3  ;;  %v2449_v3 = vadd.f32 %v2448_v0, %v2436_v30 }
 0x1e4   : > { %v2462_v4 = vadd.f32 %v2461_v62, %v2449_v3 }
 0x1e9   : > { %v2450_v38 = vpop.f32.mrf.mxu2 }
 0x1ea   : > { %v2463_v2 = vpop.f32.mrf.mxu3 }
 0x1f9   : > { %v2474_v5 = vpop.f32.mrf.mxu0 }
 0x1fa   : > { %v2487_v61 = vpop.f32.mrf.mxu1  ;;  %v2475_v24 = vadd.f32 %v2474_v5, %v2462_v4 }
 0x1fc   : > { %v2488_v6 = vadd.f32 %v2487_v61, %v2475_v24 }
 0x1fe   : > { %v2580_v8 = vrot.slane %v2488_v6, 6  ;;  %v2589_v10 = vrot.slane %v2488_v6, 2  ;;  %2603 = sbr.rel (!%p4298_p10) target bundleno = 522 (0x20a), region = 75 }
 0x200   : > { %2586 = vst [vmem:[%s4999_s13 + $0xa0] sm:$0x3c] %v2580_v8 }
 0x201   : > { %3788 = vst [vmem:[%s4999_s13 + $0x148] sm:$0x3c] %v2589_v10  ;;  %v2476_v9 = vpop.f32.mrf.mxu0 }
 0x202   : > { %v2489_v54 = vpop.f32.mrf.mxu1 }
 0x207   : > { %v2659_v31 = vld [vmem:[%s4999_s13 + $0xa0] sm:$0xff] }
 0x208   : > { %2660 = vst [vmem:[%s5169_s15 + $0x130] sm:$0xff] %v2659_v31  ;;  %v2701_v55 = vld [vmem:[%s4999_s13 + $0x148] sm:$0xff] }
 0x209   : > { %2702 = vst [vmem:[%s5169_s15 + $0x280] sm:$0xff] %v2701_v55 }
 0x20a PF: > { %p15_p4 = scmp.ge.s32.totalorder %s4272_s20, 4   ;;  %s5277_s15 = smov %s4209_s16 }
 0x20b   : > { %s5278_s16 = smov %s4213_s17  ;;  %s5279_s17 = smov %s4282_s23 }
 0x20c   : > { %s5280_s18 = smov %s4272_s20  ;;  %17 = sbr.rel (!%p15_p4) target bundleno = 6 (0x6), region = 147 }
 0x211   :  { %2718 = vsyncpa [#allocation4], 1 }
 0x212   :  { %2720 = vsyncpa [#allocation4 + $0x1], 1 }
 0x213   :  { %2721 = vsyncpa [#allocation6], 1 }
 0x214   :  { %2723 = vsyncpa [#allocation6 + $0x1], 1 }

</bundles_post_ra>
